<compile_context>
chip_gen: v6e
topology: v6e:2x2x1
jax: 0.10.0
libtpu: 0.0.40
codegen_flags: <defaults>
</compile_context>

<pallas_src>
import functools

import jax
import jax.numpy as jnp
from jax.experimental import pallas as pl
from jax.experimental.pallas import tpu as pltpu


def _vmem_limit_bytes():
    """~3/4 of the chip's VMEM, capped at 96 MiB; safe fallback if unknown."""
    try:
        info = pltpu.get_tpu_info()
        cap = getattr(info, "vmem_capacity_bytes", None)
        if cap:
            return int(min(cap * 3 // 4, 96 * 1024 * 1024))
    except Exception:
        pass
    return 48 * 1024 * 1024


_COMPILER_PARAMS = pltpu.CompilerParams(
    dimension_semantics=("parallel",),
    vmem_limit_bytes=_vmem_limit_bytes(),
)


def _round_up(x, m):
    return ((x + m - 1) // m) * m


def _choose_rows_block(total, target, multiple, unit=1):
    """Pick (block_rows, padded_total_rows).

    block_rows is a multiple of `multiple` (or spans the whole padded range);
    padded_total_rows is a multiple of block_rows and of `unit`.  Prefers
    exact divisors of `total` so no wrapper-side padding copy is needed.
    """
    if total <= max(target, multiple):
        pad = _round_up(total, unit)           # single full tile
        return pad, pad
    target = max(multiple, (target // multiple) * multiple)
    best = None
    for b in range(target, multiple - 1, -multiple):
        if total % b == 0:
            best = b
            break
    if best is not None and best * 4 >= target:
        return best, total                     # big-enough exact divisor
    return target, _round_up(total, target)    # pad instead of a tiny block


def _maybe_pad_rows(a, rows_pad):
    rows = a.shape[0]
    if rows_pad == rows:
        return a
    return jnp.pad(a, ((0, rows_pad - rows),) + ((0, 0),) * (a.ndim - 1))


def _bn_scale_bias(sum_, sumsq, count, gamma, beta, eps):
    """Fold global (sum, sum_sq) into per-channel scale/bias (training BN)."""
    mean = sum_ / count                        # (C,)
    var = sumsq / count - mean * mean          # biased variance
    scale = gamma * jax.lax.rsqrt(var + eps)   # (1, C)
    bias = beta - mean * scale                 # (1, C)
    return scale, bias


# --------------------------------------------------------------------------- #
# Kernels
# --------------------------------------------------------------------------- #
def _conv1x1_stats_kernel(x_ref, w_ref, y_ref, st_ref):
    """Lane-packed 1x1 conv (block-diagonal weight) + BN partial stats."""
    x = x_ref[...].astype(w_ref.dtype)         # in-kernel cast (operands only)
    y = jnp.dot(x, w_ref[...], preferred_element_type=jnp.float32)
    st_ref[0, 0:1, :] = jnp.sum(y, axis=0, keepdims=True)
    st_ref[0, 1:2, :] = jnp.sum(y * y, axis=0, keepdims=True)
    y_ref[...] = y.astype(y_ref.dtype)


def _conv3x3_kernel(y1_ref, s_ref, b_ref, w_ref, y2_ref, st_ref, pad_ref):
    """BN1-apply + ReLU + 3x3 conv (9 tap-accumulated dots) + BN2 stats."""
    _, H, W, C = y1_ref.shape

    a = y1_ref[0].astype(jnp.float32)
    a = jnp.maximum(a * s_ref[0] + b_ref[0], 0.0)

    # Zero only the 1-pixel halo; the interior is fully overwritten below.
    zrow = jnp.zeros((1, W + 2, C), pad_ref.dtype)
    pad_ref[0:1] = zrow
    pad_ref[H + 1:H + 2] = zrow
    zcol = jnp.zeros((H + 2, 1, C), pad_ref.dtype)
    pad_ref[:, 0:1] = zcol
    pad_ref[:, W + 1:W + 2] = zcol
    pad_ref[1:H + 1, 1:W + 1, :] = a.astype(pad_ref.dtype)

    # Tap accumulation: 9 small-K MXU matmuls into an f32 accumulator
    # (no (H*W, 9C) im2col temp -> less VMEM, fewer vector stores).
    acc = jnp.zeros((H * W, C), jnp.float32)
    for dh in range(3):
        for dw in range(3):
            t = dh * 3 + dw
            x_t = pad_ref[dh:dh + H, dw:dw + W, :].reshape(H * W, C)
            acc = acc + jnp.dot(x_t, w_ref[t * C:(t + 1) * C, :],
                                preferred_element_type=jnp.float32)

    st_ref[0, 0:1, :] = jnp.sum(acc, axis=0, keepdims=True)
    st_ref[0, 1:2, :] = jnp.sum(acc * acc, axis=0, keepdims=True)
    y2_ref[0] = acc.reshape(H, W, C).astype(y2_ref.dtype)


def _conv3_stats_only_kernel(rows_valid, blk, y_ref, s_ref, b_ref, w_ref, st_ref):
    """BN2-apply + ReLU + 1x1 conv3, emit ONLY BN3 partial stats (no y3 write)."""
    a = y_ref[...].astype(jnp.float32)
    a = jnp.maximum(a * s_ref[...] + b_ref[...], 0.0)
    y = jnp.dot(a.astype(w_ref.dtype), w_ref[...],
                preferred_element_type=jnp.float32)
    if rows_valid is not None:                 # mask padded rows (trace-time branch)
        row0 = pl.program_id(0) * blk
        r = jax.lax.broadcasted_iota(jnp.int32, y.shape, 0)
        y = jnp.where(r + row0 < rows_valid, y, 0.0)
    st_ref[0, 0:1, :] = jnp.sum(y, axis=0, keepdims=True)
    st_ref[0, 1:2, :] = jnp.sum(y * y, axis=0, keepdims=True)


def _conv3_bn_residual_relu_kernel(y_ref, x_ref, s2_ref, b2_ref, w_ref,
                                   s3_ref, b3_ref, o_ref):
    """Recompute conv3 from y2, then BN3 + residual add + ReLU."""
    a = y_ref[...].astype(jnp.float32)
    a = jnp.maximum(a * s2_ref[...] + b2_ref[...], 0.0)
    y3 = jnp.dot(a.astype(w_ref.dtype), w_ref[...],
                 preferred_element_type=jnp.float32)
    out = y3 * s3_ref[...] + b3_ref[...] + x_ref[...].astype(jnp.float32)
    o_ref[...] = jnp.maximum(out, 0.0).astype(o_ref.dtype)


# --------------------------------------------------------------------------- #
# Wrapper
# --------------------------------------------------------------------------- #
@functools.partial(jax.jit, static_argnames=("compute_dtype", "out_dtype",
                                             "row_block", "eps"))
def bottleneck_forward(x, w1, w2col, w3, g1, b1, g2, b2, g3, b3, *,
                       compute_dtype=jnp.bfloat16, out_dtype=None,
                       row_block=1024, eps=1e-5):
    N, H, W, Cin = x.shape
    width = w1.shape[1]
    Cout = w3.shape[1]
    assert Cin == Cout, "identity skip connection requires inplanes == planes*4"
    rows = N * H * W
    cd = jnp.dtype(compute_dtype)
    od = jnp.dtype(out_dtype) if out_dtype is not None else x.dtype
    sub = 16 if cd.itemsize < 4 else 8         # sublane packing multiple

    # Lane-packing factor for the stage-1 output: G rows share one 128-lane row.
    G = 128 // width if (width < 128 and 128 % width == 0) else 1

    # Weights are tiny: cast once in the wrapper; they stay resident in VMEM.
    w1c = w1.astype(cd)
    if G > 1:
        eye = jnp.eye(G, dtype=cd)
        # block-diagonal (G*Cin, G*width): [(g,c),(h,d)] = eye[g,h] * w1[c,d]
        w1c = (eye[:, None, :, None] * w1c[None, :, None, :]).reshape(G * Cin, G * width)
    w2c = w2col.astype(cd)
    w3c = w3.astype(cd)

    # ---- stage 1: conv1 (1x1, lane-dense) + BN1 partial stats ---------------
    blk1, rows_pad1 = _choose_rows_block(rows, row_block, sub * G, unit=G)
    x_p = _maybe_pad_rows(x.reshape(rows, Cin), rows_pad1)   # zero rows: stat-safe
    Rp, BR = rows_pad1 // G, blk1 // G
    li, lo = G * Cin, G * width
    n1 = Rp // BR
    y1_g, st1 = pl.pallas_call(
        _conv1x1_stats_kernel,
        grid=(n1,),
        in_specs=[pl.BlockSpec((BR, li), lambda i: (i, 0)),
                  pl.BlockSpec((li, lo), lambda i: (0, 0))],
        out_specs=(pl.BlockSpec((BR, lo), lambda i: (i, 0)),
                   pl.BlockSpec((1, 2, lo), lambda i: (i, 0, 0))),
        out_shape=(jax.ShapeDtypeStruct((Rp, lo), cd),
                   jax.ShapeDtypeStruct((n1, 2, lo), jnp.float32)),
        compiler_params=_COMPILER_PARAMS,
    )(x_p.reshape(Rp, li), w1c)
    s1 = jnp.sum(st1, axis=0).reshape(2, G, width).sum(axis=1)   # fold lane groups
    scale1, bias1 = _bn_scale_bias(s1[0], s1[1], rows, g1, b1, eps)

    # ---- stage 2: BN1-apply + ReLU + conv2 (3x3, tap accumulation) + BN2 ----
    y1 = y1_g.reshape(rows_pad1, width)[:rows].reshape(N, H, W, width)
    y2, st2 = pl.pallas_call(
        _conv3x3_kernel,
        grid=(N,),
        in_specs=[pl.BlockSpec((1, H, W, width), lambda n: (n, 0, 0, 0)),
                  pl.BlockSpec((1, width), lambda n: (0, 0)),
                  pl.BlockSpec((1, width), lambda n: (0, 0)),
                  pl.BlockSpec((9 * width, width), lambda n: (0, 0))],
        out_specs=(pl.BlockSpec((1, H, W, width), lambda n: (n, 0, 0, 0)),
                   pl.BlockSpec((1, 2, width), lambda n: (n, 0, 0))),
        out_shape=(jax.ShapeDtypeStruct((N, H, W, width), cd),
                   jax.ShapeDtypeStruct((N, 2, width), jnp.float32)),
        scratch_shapes=[pltpu.VMEM((H + 2, W + 2, width), cd)],
        compiler_params=_COMPILER_PARAMS,
    )(y1, scale1, bias1, w2c)
    s2 = jnp.sum(st2, axis=0)
    scale2, bias2 = _bn_scale_bias(s2[0], s2[1], rows, g2, b2, eps)

    # ---- stage 3: BN3 partial stats only (no y3 writeback) ------------------
    blk34, rows_pad34 = _choose_rows_block(rows, row_block, sub)
    y2_p = _maybe_pad_rows(y2.reshape(rows, width), rows_pad34)
    x_p34 = _maybe_pad_rows(x.reshape(rows, Cout), rows_pad34)
    n34 = rows_pad34 // blk34
    rows_valid = None if rows_pad34 == rows else rows
    st3 = pl.pallas_call(
        functools.partial(_conv3_stats_only_kernel, rows_valid, blk34),
        grid=(n34,),
        in_specs=[pl.BlockSpec((blk34, width), lambda i: (i, 0)),
                  pl.BlockSpec((1, width), lambda i: (0, 0)),
                  pl.BlockSpec((1, width), lambda i: (0, 0)),
                  pl.BlockSpec((width, Cout), lambda i: (0, 0))],
        out_specs=pl.BlockSpec((1, 2, Cout), lambda i: (i, 0, 0)),
        out_shape=jax.ShapeDtypeStruct((n34, 2, Cout), jnp.float32),
        compiler_params=_COMPILER_PARAMS,
    )(y2_p, scale2, bias2, w3c)
    s3 = jnp.sum(st3, axis=0)
    scale3, bias3 = _bn_scale_bias(s3[0], s3[1], rows, g3, b3, eps)

    # ---- stage 4: recompute conv3, BN3 + residual + ReLU --------------------
    out_flat = pl.pallas_call(
        _conv3_bn_residual_relu_kernel,
        grid=(n34,),
        in_specs=[pl.BlockSpec((blk34, width), lambda i: (i, 0)),
                  pl.BlockSpec((blk34, Cout), lambda i: (i, 0)),
                  pl.BlockSpec((1, width), lambda i: (0, 0)),
                  pl.BlockSpec((1, width), lambda i: (0, 0)),
                  pl.BlockSpec((width, Cout), lambda i: (0, 0)),
                  pl.BlockSpec((1, Cout), lambda i: (0, 0)),
                  pl.BlockSpec((1, Cout), lambda i: (0, 0))],
        out_specs=pl.BlockSpec((blk34, Cout), lambda i: (i, 0)),
        out_shape=jax.ShapeDtypeStruct((rows_pad34, Cout), od),
        compiler_params=_COMPILER_PARAMS,
    )(y2_p, x_p34, scale2, bias2, w3c, scale3, bias3)

    return out_flat[:rows].reshape(N, H, W, Cout)


# --------------------------------------------------------------------------- #
# Pure-JAX reference (same semantics) for correctness checking
# --------------------------------------------------------------------------- #
def reference_forward(x, w1, w2col, w3, g1, b1, g2, b2, g3, b3, eps=1e-5):
    def bn(y, g, b):
        m = y.mean(axis=(0, 1, 2), keepdims=True)
        v = ((y - m) ** 2).mean(axis=(0, 1, 2), keepdims=True)
        return (y - m) * jax.lax.rsqrt(v + eps) * g.reshape(1, 1, 1, -1) \
            + b.reshape(1, 1, 1, -1)

    width = w1.shape[1]
    y = jnp.einsum('nhwc,cd->nhwd', x, w1)
    y = jax.nn.relu(bn(y, g1, b1))
    w2_hwio = w2col.reshape(3, 3, width, width)
    y = jax.lax.conv_general_dilated(
        y, w2_hwio, window_strides=(1, 1), padding='SAME',
        dimension_numbers=('NHWC', 'HWIO', 'NHWC'))
    y = jax.nn.relu(bn(y, g2, b2))
    y = jnp.einsum('nhwc,cd->nhwd', y, w3)
    y = bn(y, g3, b3)
    return jax.nn.relu(y + x)


if __name__ == "__main__":
    # Bottleneck(inplanes=16, planes=4): width = 4, Cout = planes*4 = 16 ==
    # inplanes, so the identity skip is valid without a downsample.
    N, H, W = 2, 8, 8
    inplanes, planes = 16, 4
    width = planes                      # base_width=64, groups=1
    Cout = planes * 4                   # expansion = 4

    key = jax.random.PRNGKey(0)
    kx, k1, k2, k3 = jax.random.split(key, 4)
    x = jax.random.normal(kx, (N, H, W, inplanes), jnp.float32)
    w1 = jax.random.normal(k1, (inplanes, width), jnp.float32) * 0.1
    w2col = jax.random.normal(k2, (9 * width, width), jnp.float32) * 0.1
    w3 = jax.random.normal(k3, (width, Cout), jnp.float32) * 0.1
    # BatchNorm affine params at PyTorch init: gamma=1, beta=0.
    g1, b1 = jnp.ones((1, width), jnp.float32), jnp.zeros((1, width), jnp.float32)
    g2, b2 = jnp.ones((1, width), jnp.float32), jnp.zeros((1, width), jnp.float32)
    g3, b3 = jnp.ones((1, Cout), jnp.float32), jnp.zeros((1, Cout), jnp.float32)

    ref = jax.block_until_ready(
        reference_forward(x, w1, w2col, w3, g1, b1, g2, b2, g3, b3))

    # f32 compute path: tight check against the PyTorch-semantics reference.
    out_f32 = jax.block_until_ready(
        bottleneck_forward(x, w1, w2col, w3, g1, b1, g2, b2, g3, b3,
                           compute_dtype=jnp.float32))
    assert out_f32.shape == (N, H, W, Cout)
    err32 = float(jnp.max(jnp.abs(out_f32 - ref)))
    assert err32 < 1e-3, f"f32 max abs err = {err32}"

    # Default path: bf16 intermediates / MXU operands, f32 accumulation & BN.
    out_bf16 = jax.block_until_ready(
        bottleneck_forward(x, w1, w2col, w3, g1, b1, g2, b2, g3, b3))
    errbf = float(jnp.max(jnp.abs(out_bf16.astype(jnp.float32) - ref)))
    assert errbf < 0.3, f"bf16 max abs err = {errbf}"

    print("KERNEL_OK")
</pallas_src>

<mosaic_0001>
module attributes {stable_mosaic.version = 11 : i64} {
  func.func @_conv1x1_stats_kernel(%arg0: i32, %arg1: memref<4x512xf32, #tpu.memory_space<vmem>>, %arg2: memref<512x128xf32, #tpu.memory_space<vmem>>, %arg3: memref<4x128xf32, #tpu.memory_space<vmem>>, %arg4: memref<1x2x128xf32, #tpu.memory_space<vmem>>) attributes {dimension_semantics = [#tpu.dimension_semantics<parallel>], iteration_bounds = array<i64: 1>, scalar_prefetch = 0 : i64, scratch_operands = 0 : i64, tpu.core_type = #tpu.core_type<tc>, window_params = [{transform_indices = @transform_0, window_bounds = array<i64: 4, 512>}, {pipeline_mode = #tpu.pipeline_mode<synchronous>, transform_indices = @transform_1, window_bounds = array<i64: 512, 128>}, {transform_indices = @transform_2, window_bounds = array<i64: 4, 128>}, {transform_indices = @transform_3, window_bounds = array<i64: 1, 2, 128>}]} {
    %c0 = arith.constant 0 : index
    %c0_0 = arith.constant 0 : index
    %0 = vector.load %arg1[%c0, %c0_0] : memref<4x512xf32, #tpu.memory_space<vmem>>, vector<4x512xf32>
    %c0_1 = arith.constant 0 : index
    %c0_2 = arith.constant 0 : index
    %1 = vector.load %arg2[%c0_1, %c0_2] : memref<512x128xf32, #tpu.memory_space<vmem>>, vector<512x128xf32>
    %cst = arith.constant dense<0.000000e+00> : vector<4x128xf32>
    %2 = tpu.matmul %0, %1, %cst {dimension_numbers = #tpu.dot_dimension_numbers<[1], [0], [0], [1], [0, 0, 1, 1], [], []>} : vector<4x512xf32>, vector<512x128xf32>, vector<4x128xf32> -> vector<4x128xf32>
    %cst_3 = arith.constant dense<0.000000e+00> : vector<128xf32>
    %3 = vector.multi_reduction <add>, %2, %cst_3 [0] : vector<4x128xf32> to vector<128xf32>
    %4 = vector.shape_cast %3 : vector<128xf32> to vector<1x128xf32>
    %c0_4 = arith.constant 0 : index
    %c0_5 = arith.constant 0 : index
    %c0_6 = arith.constant 0 : index
    %5 = vector.load %arg4[%c0_4, %c0_5, %c0_6] : memref<1x2x128xf32, #tpu.memory_space<vmem>>, vector<1x1x128xf32>
    %6 = vector.shape_cast %5 : vector<1x1x128xf32> to vector<1x128xf32>
    %7 = vector.shape_cast %4 : vector<1x128xf32> to vector<1x1x128xf32>
    tpu.vector_store %arg4[%c0_4, %c0_5, %c0_6], %7 {strides = array<i32>} : memref<1x2x128xf32, #tpu.memory_space<vmem>>, vector<1x1x128xf32>,
    %8 = arith.mulf %2, %2 : vector<4x128xf32>
    %cst_7 = arith.constant dense<0.000000e+00> : vector<128xf32>
    %9 = vector.multi_reduction <add>, %8, %cst_7 [0] : vector<4x128xf32> to vector<128xf32>
    %10 = vector.shape_cast %9 : vector<128xf32> to vector<1x128xf32>
    %c0_8 = arith.constant 0 : index
    %c1 = arith.constant 1 : index
    %c0_9 = arith.constant 0 : index
    %11 = vector.load %arg4[%c0_8, %c1, %c0_9] : memref<1x2x128xf32, #tpu.memory_space<vmem>>, vector<1x1x128xf32>
    %12 = vector.shape_cast %11 : vector<1x1x128xf32> to vector<1x128xf32>
    %13 = vector.shape_cast %10 : vector<1x128xf32> to vector<1x1x128xf32>
    tpu.vector_store %arg4[%c0_8, %c1, %c0_9], %13 {strides = array<i32>} : memref<1x2x128xf32, #tpu.memory_space<vmem>>, vector<1x1x128xf32>,
    %c0_10 = arith.constant 0 : index
    %c0_11 = arith.constant 0 : index
    %14 = vector.load %arg3[%c0_10, %c0_11] : memref<4x128xf32, #tpu.memory_space<vmem>>, vector<4x128xf32>
    tpu.vector_store %arg3[%c0_10, %c0_11], %2 {strides = array<i32>} : memref<4x128xf32, #tpu.memory_space<vmem>>, vector<4x128xf32>,
    return
  }
  func.func @transform_0(%arg0: i32) -> (i32, i32) {
    %c0_i32 = arith.constant 0 : i32
    %c0_i32_0 = arith.constant 0 : i32
    return %arg0, %c0_i32 : i32, i32
  }
  func.func @transform_1(%arg0: i32) -> (i32, i32) {
    %c0_i32 = arith.constant 0 : i32
    %c0_i32_0 = arith.constant 0 : i32
    %c0_i32_1 = arith.constant 0 : i32
    return %c0_i32, %c0_i32_0 : i32, i32
  }
  func.func @transform_2(%arg0: i32) -> (i32, i32) {
    %c0_i32 = arith.constant 0 : i32
    %c0_i32_0 = arith.constant 0 : i32
    return %arg0, %c0_i32 : i32, i32
  }
  func.func @transform_3(%arg0: i32) -> (i32, i32, i32) {
    %c0_i32 = arith.constant 0 : i32
    %c0_i32_0 = arith.constant 0 : i32
    %c0_i32_1 = arith.constant 0 : i32
    return %arg0, %c0_i32, %c0_i32_0 : i32, i32, i32
  }
}

module attributes {stable_mosaic.version = 11 : i64} {
  func.func @_conv3_stats_only_kernel(%arg0: i32, %arg1: memref<128x4xf32, #tpu.memory_space<vmem>>, %arg2: memref<1x4xf32, #tpu.memory_space<vmem>>, %arg3: memref<1x4xf32, #tpu.memory_space<vmem>>, %arg4: memref<4x16xf32, #tpu.memory_space<vmem>>, %arg5: memref<1x2x16xf32, #tpu.memory_space<vmem>>) attributes {dimension_semantics = [#tpu.dimension_semantics<parallel>], iteration_bounds = array<i64: 1>, scalar_prefetch = 0 : i64, scratch_operands = 0 : i64, tpu.core_type = #tpu.core_type<tc>, window_params = [{transform_indices = @transform_0, window_bounds = array<i64: 128, 4>}, {pipeline_mode = #tpu.pipeline_mode<synchronous>, transform_indices = @transform_1, window_bounds = array<i64: 1, 4>}, {pipeline_mode = #tpu.pipeline_mode<synchronous>, transform_indices = @transform_2, window_bounds = array<i64: 1, 4>}, {pipeline_mode = #tpu.pipeline_mode<synchronous>, transform_indices = @transform_3, window_bounds = array<i64: 4, 16>}, {transform_indices = @transform_4, window_bounds = array<i64: 1, 2, 16>}]} {
    %c0 = arith.constant 0 : index
    %c0_0 = arith.constant 0 : index
    %0 = vector.load %arg1[%c0, %c0_0] : memref<128x4xf32, #tpu.memory_space<vmem>>, vector<128x4xf32>
    %c0_1 = arith.constant 0 : index
    %c0_2 = arith.constant 0 : index
    %1 = vector.load %arg2[%c0_1, %c0_2] : memref<1x4xf32, #tpu.memory_space<vmem>>, vector<1x4xf32>
    %2 = vector.broadcast %1 : vector<1x4xf32> to vector<128x4xf32>
    %3 = arith.mulf %0, %2 : vector<128x4xf32>
    %c0_3 = arith.constant 0 : index
    %c0_4 = arith.constant 0 : index
    %4 = vector.load %arg3[%c0_3, %c0_4] : memref<1x4xf32, #tpu.memory_space<vmem>>, vector<1x4xf32>
    %5 = vector.broadcast %4 : vector<1x4xf32> to vector<128x4xf32>
    %6 = arith.addf %3, %5 : vector<128x4xf32>
    %cst = arith.constant 0.000000e+00 : f32
    %7 = vector.broadcast %cst : f32 to vector<128x4xf32>
    %8 = arith.maximumf %6, %7 : vector<128x4xf32>
    %c0_5 = arith.constant 0 : index
    %c0_6 = arith.constant 0 : index
    %9 = vector.load %arg4[%c0_5, %c0_6] : memref<4x16xf32, #tpu.memory_space<vmem>>, vector<4x16xf32>
    %cst_7 = arith.constant dense<0.000000e+00> : vector<128x16xf32>
    %10 = tpu.matmul %8, %9, %cst_7 {dimension_numbers = #tpu.dot_dimension_numbers<[1], [0], [0], [1], [0, 0, 1, 1], [], []>} : vector<128x4xf32>, vector<4x16xf32>, vector<128x16xf32> -> vector<128x16xf32>
    %cst_8 = arith.constant dense<0.000000e+00> : vector<16xf32>
    %11 = vector.multi_reduction <add>, %10, %cst_8 [0] : vector<128x16xf32> to vector<16xf32>
    %12 = vector.shape_cast %11 : vector<16xf32> to vector<1x16xf32>
    %c0_9 = arith.constant 0 : index
    %c0_10 = arith.constant 0 : index
    %c0_11 = arith.constant 0 : index
    %13 = vector.load %arg5[%c0_9, %c0_10, %c0_11] : memref<1x2x16xf32, #tpu.memory_space<vmem>>, vector<1x1x16xf32>
    %14 = vector.shape_cast %13 : vector<1x1x16xf32> to vector<1x16xf32>
    %15 = vector.shape_cast %12 : vector<1x16xf32> to vector<1x1x16xf32>
    tpu.vector_store %arg5[%c0_9, %c0_10, %c0_11], %15 {strides = array<i32>} : memref<1x2x16xf32, #tpu.memory_space<vmem>>, vector<1x1x16xf32>,
    %16 = arith.mulf %10, %10 : vector<128x16xf32>
    %cst_12 = arith.constant dense<0.000000e+00> : vector<16xf32>
    %17 = vector.multi_reduction <add>, %16, %cst_12 [0] : vector<128x16xf32> to vector<16xf32>
    %18 = vector.shape_cast %17 : vector<16xf32> to vector<1x16xf32>
    %c0_13 = arith.constant 0 : index
    %c1 = arith.constant 1 : index
    %c0_14 = arith.constant 0 : index
    %19 = vector.load %arg5[%c0_13, %c1, %c0_14] : memref<1x2x16xf32, #tpu.memory_space<vmem>>, vector<1x1x16xf32>
    %20 = vector.shape_cast %19 : vector<1x1x16xf32> to vector<1x16xf32>
    %21 = vector.shape_cast %18 : vector<1x16xf32> to vector<1x1x16xf32>
    tpu.vector_store %arg5[%c0_13, %c1, %c0_14], %21 {strides = array<i32>} : memref<1x2x16xf32, #tpu.memory_space<vmem>>, vector<1x1x16xf32>,
    return
  }
  func.func @transform_0(%arg0: i32) -> (i32, i32) {
    %c0_i32 = arith.constant 0 : i32
    %c0_i32_0 = arith.constant 0 : i32
    return %arg0, %c0_i32 : i32, i32
  }
  func.func @transform_1(%arg0: i32) -> (i32, i32) {
    %c0_i32 = arith.constant 0 : i32
    %c0_i32_0 = arith.constant 0 : i32
    %c0_i32_1 = arith.constant 0 : i32
    return %c0_i32, %c0_i32_0 : i32, i32
  }
  func.func @transform_2(%arg0: i32) -> (i32, i32) {
    %c0_i32 = arith.constant 0 : i32
    %c0_i32_0 = arith.constant 0 : i32
    %c0_i32_1 = arith.constant 0 : i32
    return %c0_i32, %c0_i32_0 : i32, i32
  }
  func.func @transform_3(%arg0: i32) -> (i32, i32) {
    %c0_i32 = arith.constant 0 : i32
    %c0_i32_0 = arith.constant 0 : i32
    %c0_i32_1 = arith.constant 0 : i32
    return %c0_i32, %c0_i32_0 : i32, i32
  }
  func.func @transform_4(%arg0: i32) -> (i32, i32, i32) {
    %c0_i32 = arith.constant 0 : i32
    %c0_i32_0 = arith.constant 0 : i32
    %c0_i32_1 = arith.constant 0 : i32
    return %arg0, %c0_i32, %c0_i32_0 : i32, i32, i32
  }
}

module attributes {stable_mosaic.version = 11 : i64} {
  func.func @_conv3x3_kernel(%arg0: i32, %arg1: memref<1x8x8x4xf32, #tpu.memory_space<vmem>>, %arg2: memref<1x4xf32, #tpu.memory_space<vmem>>, %arg3: memref<1x4xf32, #tpu.memory_space<vmem>>, %arg4: memref<36x4xf32, #tpu.memory_space<vmem>>, %arg5: memref<1x8x8x4xf32, #tpu.memory_space<vmem>>, %arg6: memref<1x2x4xf32, #tpu.memory_space<vmem>>, %arg7: memref<10x10x4xf32, #tpu.memory_space<vmem>>) attributes {dimension_semantics = [#tpu.dimension_semantics<parallel>], iteration_bounds = array<i64: 2>, scalar_prefetch = 0 : i64, scratch_operands = 1 : i64, tpu.core_type = #tpu.core_type<tc>, window_params = [{transform_indices = @transform_0, window_bounds = array<i64: 1, 8, 8, 4>}, {pipeline_mode = #tpu.pipeline_mode<synchronous>, transform_indices = @transform_1, window_bounds = array<i64: 1, 4>}, {pipeline_mode = #tpu.pipeline_mode<synchronous>, transform_indices = @transform_2, window_bounds = array<i64: 1, 4>}, {pipeline_mode = #tpu.pipeline_mode<synchronous>, transform_indices = @transform_3, window_bounds = array<i64: 36, 4>}, {transform_indices = @transform_4, window_bounds = array<i64: 1, 8, 8, 4>}, {transform_indices = @transform_5, window_bounds = array<i64: 1, 2, 4>}]} {
    %c0 = arith.constant 0 : index
    %c0_0 = arith.constant 0 : index
    %c0_1 = arith.constant 0 : index
    %c0_2 = arith.constant 0 : index
    %0 = vector.load %arg1[%c0, %c0_0, %c0_1, %c0_2] : memref<1x8x8x4xf32, #tpu.memory_space<vmem>>, vector<1x8x8x4xf32>
    %1 = vector.shape_cast %0 : vector<1x8x8x4xf32> to vector<8x8x4xf32>
    %c0_3 = arith.constant 0 : index
    %c0_4 = arith.constant 0 : index
    %2 = vector.load %arg2[%c0_3, %c0_4] : memref<1x4xf32, #tpu.memory_space<vmem>>, vector<1x4xf32>
    %3 = vector.shape_cast %2 : vector<1x4xf32> to vector<4xf32>
    %4 = vector.shape_cast %3 : vector<4xf32> to vector<1x1x4xf32>
    %5 = vector.broadcast %4 : vector<1x1x4xf32> to vector<8x8x4xf32>
    %6 = arith.mulf %1, %5 : vector<8x8x4xf32>
    %c0_5 = arith.constant 0 : index
    %c0_6 = arith.constant 0 : index
    %7 = vector.load %arg3[%c0_5, %c0_6] : memref<1x4xf32, #tpu.memory_space<vmem>>, vector<1x4xf32>
    %8 = vector.shape_cast %7 : vector<1x4xf32> to vector<4xf32>
    %9 = vector.shape_cast %8 : vector<4xf32> to vector<1x1x4xf32>
    %10 = vector.broadcast %9 : vector<1x1x4xf32> to vector<8x8x4xf32>
    %11 = arith.addf %6, %10 : vector<8x8x4xf32>
    %cst = arith.constant 0.000000e+00 : f32
    %12 = vector.broadcast %cst : f32 to vector<8x8x4xf32>
    %13 = arith.maximumf %11, %12 : vector<8x8x4xf32>
    %cst_7 = arith.constant 0.000000e+00 : f32
    %14 = vector.broadcast %cst_7 : f32 to vector<1x10x4xf32>
    %c0_8 = arith.constant 0 : index
    %c0_9 = arith.constant 0 : index
    %c0_10 = arith.constant 0 : index
    %15 = vector.load %arg7[%c0_8, %c0_9, %c0_10] : memref<10x10x4xf32, #tpu.memory_space<vmem>>, vector<1x10x4xf32>
    tpu.vector_store %arg7[%c0_8, %c0_9, %c0_10], %14 {strides = array<i32>} : memref<10x10x4xf32, #tpu.memory_space<vmem>>, vector<1x10x4xf32>,
    %c9 = arith.constant 9 : index
    %c0_11 = arith.constant 0 : index
    %c0_12 = arith.constant 0 : index
    %16 = vector.load %arg7[%c9, %c0_11, %c0_12] : memref<10x10x4xf32, #tpu.memory_space<vmem>>, vector<1x10x4xf32>
    tpu.vector_store %arg7[%c9, %c0_11, %c0_12], %14 {strides = array<i32>} : memref<10x10x4xf32, #tpu.memory_space<vmem>>, vector<1x10x4xf32>,
    %cst_13 = arith.constant 0.000000e+00 : f32
    %17 = vector.broadcast %cst_13 : f32 to vector<10x1x4xf32>
    %c0_14 = arith.constant 0 : index
    %c0_15 = arith.constant 0 : index
    %c0_16 = arith.constant 0 : index
    %18 = vector.load %arg7[%c0_14, %c0_15, %c0_16] : memref<10x10x4xf32, #tpu.memory_space<vmem>>, vector<10x1x4xf32>
    tpu.vector_store %arg7[%c0_14, %c0_15, %c0_16], %17 {strides = array<i32>} : memref<10x10x4xf32, #tpu.memory_space<vmem>>, vector<10x1x4xf32>,
    %c0_17 = arith.constant 0 : index
    %c9_18 = arith.constant 9 : index
    %c0_19 = arith.constant 0 : index
    %19 = vector.load %arg7[%c0_17, %c9_18, %c0_19] : memref<10x10x4xf32, #tpu.memory_space<vmem>>, vector<10x1x4xf32>
    tpu.vector_store %arg7[%c0_17, %c9_18, %c0_19], %17 {strides = array<i32>} : memref<10x10x4xf32, #tpu.memory_space<vmem>>, vector<10x1x4xf32>,
    %c1 = arith.constant 1 : index
    %c1_20 = arith.constant 1 : index
    %c0_21 = arith.constant 0 : index
    %20 = vector.load %arg7[%c1, %c1_20, %c0_21] : memref<10x10x4xf32, #tpu.memory_space<vmem>>, vector<8x8x4xf32>
    tpu.vector_store %arg7[%c1, %c1_20, %c0_21], %13 {strides = array<i32>} : memref<10x10x4xf32, #tpu.memory_space<vmem>>, vector<8x8x4xf32>,
    %cst_22 = arith.constant 0.000000e+00 : f32
    %21 = vector.broadcast %cst_22 : f32 to vector<64x4xf32>
    %c0_23 = arith.constant 0 : index
    %c0_24 = arith.constant 0 : index
    %c0_25 = arith.constant 0 : index
    %22 = vector.load %arg7[%c0_23, %c0_24, %c0_25] : memref<10x10x4xf32, #tpu.memory_space<vmem>>, vector<8x8x4xf32>
    %23 = vector.shape_cast %22 : vector<8x8x4xf32> to vector<64x4xf32>
    %c0_26 = arith.constant 0 : index
    %c0_27 = arith.constant 0 : index
    %24 = vector.load %arg4[%c0_26, %c0_27] : memref<36x4xf32, #tpu.memory_space<vmem>>, vector<4x4xf32>
    %cst_28 = arith.constant dense<0.000000e+00> : vector<64x4xf32>
    %25 = tpu.matmul %23, %24, %cst_28 {dimension_numbers = #tpu.dot_dimension_numbers<[1], [0], [0], [1], [0, 0, 1, 1], [], []>} : vector<64x4xf32>, vector<4x4xf32>, vector<64x4xf32> -> vector<64x4xf32>
    %26 = arith.addf %21, %25 : vector<64x4xf32>
    %c0_29 = arith.constant 0 : index
    %c1_30 = arith.constant 1 : index
    %c0_31 = arith.constant 0 : index
    %27 = vector.load %arg7[%c0_29, %c1_30, %c0_31] : memref<10x10x4xf32, #tpu.memory_space<vmem>>, vector<8x8x4xf32>
    %28 = vector.shape_cast %27 : vector<8x8x4xf32> to vector<64x4xf32>
    %c4 = arith.constant 4 : index
    %c0_32 = arith.constant 0 : index
    %29 = vector.load %arg4[%c4, %c0_32] : memref<36x4xf32, #tpu.memory_space<vmem>>, vector<4x4xf32>
    %cst_33 = arith.constant dense<0.000000e+00> : vector<64x4xf32>
    %30 = tpu.matmul %28, %29, %cst_33 {dimension_numbers = #tpu.dot_dimension_numbers<[1], [0], [0], [1], [0, 0, 1, 1], [], []>} : vector<64x4xf32>, vector<4x4xf32>, vector<64x4xf32> -> vector<64x4xf32>
    %31 = arith.addf %26, %30 : vector<64x4xf32>
    %c0_34 = arith.constant 0 : index
    %c2 = arith.constant 2 : index
    %c0_35 = arith.constant 0 : index
    %32 = vector.load %arg7[%c0_34, %c2, %c0_35] : memref<10x10x4xf32, #tpu.memory_space<vmem>>, vector<8x8x4xf32>
    %33 = vector.shape_cast %32 : vector<8x8x4xf32> to vector<64x4xf32>
    %c8 = arith.constant 8 : index
    %c0_36 = arith.constant 0 : index
    %34 = vector.load %arg4[%c8, %c0_36] : memref<36x4xf32, #tpu.memory_space<vmem>>, vector<4x4xf32>
    %cst_37 = arith.constant dense<0.000000e+00> : vector<64x4xf32>
    %35 = tpu.matmul %33, %34, %cst_37 {dimension_numbers = #tpu.dot_dimension_numbers<[1], [0], [0], [1], [0, 0, 1, 1], [], []>} : vector<64x4xf32>, vector<4x4xf32>, vector<64x4xf32> -> vector<64x4xf32>
    %36 = arith.addf %31, %35 : vector<64x4xf32>
    %c1_38 = arith.constant 1 : index
    %c0_39 = arith.constant 0 : index
    %c0_40 = arith.constant 0 : index
    %37 = vector.load %arg7[%c1_38, %c0_39, %c0_40] : memref<10x10x4xf32, #tpu.memory_space<vmem>>, vector<8x8x4xf32>
    %38 = vector.shape_cast %37 : vector<8x8x4xf32> to vector<64x4xf32>
    %c12 = arith.constant 12 : index
    %c0_41 = arith.constant 0 : index
    %39 = vector.load %arg4[%c12, %c0_41] : memref<36x4xf32, #tpu.memory_space<vmem>>, vector<4x4xf32>
    %cst_42 = arith.constant dense<0.000000e+00> : vector<64x4xf32>
    %40 = tpu.matmul %38, %39, %cst_42 {dimension_numbers = #tpu.dot_dimension_numbers<[1], [0], [0], [1], [0, 0, 1, 1], [], []>} : vector<64x4xf32>, vector<4x4xf32>, vector<64x4xf32> -> vector<64x4xf32>
    %41 = arith.addf %36, %40 : vector<64x4xf32>
    %c1_43 = arith.constant 1 : index
    %c1_44 = arith.constant 1 : index
    %c0_45 = arith.constant 0 : index
    %42 = vector.load %arg7[%c1_43, %c1_44, %c0_45] : memref<10x10x4xf32, #tpu.memory_space<vmem>>, vector<8x8x4xf32>
    %43 = vector.shape_cast %42 : vector<8x8x4xf32> to vector<64x4xf32>
    %c16 = arith.constant 16 : index
    %c0_46 = arith.constant 0 : index
    %44 = vector.load %arg4[%c16, %c0_46] : memref<36x4xf32, #tpu.memory_space<vmem>>, vector<4x4xf32>
    %cst_47 = arith.constant dense<0.000000e+00> : vector<64x4xf32>
    %45 = tpu.matmul %43, %44, %cst_47 {dimension_numbers = #tpu.dot_dimension_numbers<[1], [0], [0], [1], [0, 0, 1, 1], [], []>} : vector<64x4xf32>, vector<4x4xf32>, vector<64x4xf32> -> vector<64x4xf32>
    %46 = arith.addf %41, %45 : vector<64x4xf32>
    %c1_48 = arith.constant 1 : index
    %c2_49 = arith.constant 2 : index
    %c0_50 = arith.constant 0 : index
    %47 = vector.load %arg7[%c1_48, %c2_49, %c0_50] : memref<10x10x4xf32, #tpu.memory_space<vmem>>, vector<8x8x4xf32>
    %48 = vector.shape_cast %47 : vector<8x8x4xf32> to vector<64x4xf32>
    %c20 = arith.constant 20 : index
    %c0_51 = arith.constant 0 : index
    %49 = vector.load %arg4[%c20, %c0_51] : memref<36x4xf32, #tpu.memory_space<vmem>>, vector<4x4xf32>
    %cst_52 = arith.constant dense<0.000000e+00> : vector<64x4xf32>
    %50 = tpu.matmul %48, %49, %cst_52 {dimension_numbers = #tpu.dot_dimension_numbers<[1], [0], [0], [1], [0, 0, 1, 1], [], []>} : vector<64x4xf32>, vector<4x4xf32>, vector<64x4xf32> -> vector<64x4xf32>
    %51 = arith.addf %46, %50 : vector<64x4xf32>
    %c2_53 = arith.constant 2 : index
    %c0_54 = arith.constant 0 : index
    %c0_55 = arith.constant 0 : index
    %52 = vector.load %arg7[%c2_53, %c0_54, %c0_55] : memref<10x10x4xf32, #tpu.memory_space<vmem>>, vector<8x8x4xf32>
    %53 = vector.shape_cast %52 : vector<8x8x4xf32> to vector<64x4xf32>
    %c24 = arith.constant 24 : index
    %c0_56 = arith.constant 0 : index
    %54 = vector.load %arg4[%c24, %c0_56] : memref<36x4xf32, #tpu.memory_space<vmem>>, vector<4x4xf32>
    %cst_57 = arith.constant dense<0.000000e+00> : vector<64x4xf32>
    %55 = tpu.matmul %53, %54, %cst_57 {dimension_numbers = #tpu.dot_dimension_numbers<[1], [0], [0], [1], [0, 0, 1, 1], [], []>} : vector<64x4xf32>, vector<4x4xf32>, vector<64x4xf32> -> vector<64x4xf32>
    %56 = arith.addf %51, %55 : vector<64x4xf32>
    %c2_58 = arith.constant 2 : index
    %c1_59 = arith.constant 1 : index
    %c0_60 = arith.constant 0 : index
    %57 = vector.load %arg7[%c2_58, %c1_59, %c0_60] : memref<10x10x4xf32, #tpu.memory_space<vmem>>, vector<8x8x4xf32>
    %58 = vector.shape_cast %57 : vector<8x8x4xf32> to vector<64x4xf32>
    %c28 = arith.constant 28 : index
    %c0_61 = arith.constant 0 : index
    %59 = vector.load %arg4[%c28, %c0_61] : memref<36x4xf32, #tpu.memory_space<vmem>>, vector<4x4xf32>
    %cst_62 = arith.constant dense<0.000000e+00> : vector<64x4xf32>
    %60 = tpu.matmul %58, %59, %cst_62 {dimension_numbers = #tpu.dot_dimension_numbers<[1], [0], [0], [1], [0, 0, 1, 1], [], []>} : vector<64x4xf32>, vector<4x4xf32>, vector<64x4xf32> -> vector<64x4xf32>
    %61 = arith.addf %56, %60 : vector<64x4xf32>
    %c2_63 = arith.constant 2 : index
    %c2_64 = arith.constant 2 : index
    %c0_65 = arith.constant 0 : index
    %62 = vector.load %arg7[%c2_63, %c2_64, %c0_65] : memref<10x10x4xf32, #tpu.memory_space<vmem>>, vector<8x8x4xf32>
    %63 = vector.shape_cast %62 : vector<8x8x4xf32> to vector<64x4xf32>
    %c32 = arith.constant 32 : index
    %c0_66 = arith.constant 0 : index
    %64 = vector.load %arg4[%c32, %c0_66] : memref<36x4xf32, #tpu.memory_space<vmem>>, vector<4x4xf32>
    %cst_67 = arith.constant dense<0.000000e+00> : vector<64x4xf32>
    %65 = tpu.matmul %63, %64, %cst_67 {dimension_numbers = #tpu.dot_dimension_numbers<[1], [0], [0], [1], [0, 0, 1, 1], [], []>} : vector<64x4xf32>, vector<4x4xf32>, vector<64x4xf32> -> vector<64x4xf32>
    %66 = arith.addf %61, %65 : vector<64x4xf32>
    %cst_68 = arith.constant dense<0.000000e+00> : vector<4xf32>
    %67 = vector.multi_reduction <add>, %66, %cst_68 [0] : vector<64x4xf32> to vector<4xf32>
    %68 = vector.shape_cast %67 : vector<4xf32> to vector<1x4xf32>
    %c0_69 = arith.constant 0 : index
    %c0_70 = arith.constant 0 : index
    %c0_71 = arith.constant 0 : index
    %69 = vector.load %arg6[%c0_69, %c0_70, %c0_71] : memref<1x2x4xf32, #tpu.memory_space<vmem>>, vector<1x1x4xf32>
    %70 = vector.shape_cast %69 : vector<1x1x4xf32> to vector<1x4xf32>
    %71 = vector.shape_cast %68 : vector<1x4xf32> to vector<1x1x4xf32>
    tpu.vector_store %arg6[%c0_69, %c0_70, %c0_71], %71 {strides = array<i32>} : memref<1x2x4xf32, #tpu.memory_space<vmem>>, vector<1x1x4xf32>,
    %72 = arith.mulf %66, %66 : vector<64x4xf32>
    %cst_72 = arith.constant dense<0.000000e+00> : vector<4xf32>
    %73 = vector.multi_reduction <add>, %72, %cst_72 [0] : vector<64x4xf32> to vector<4xf32>
    %74 = vector.shape_cast %73 : vector<4xf32> to vector<1x4xf32>
    %c0_73 = arith.constant 0 : index
    %c1_74 = arith.constant 1 : index
    %c0_75 = arith.constant 0 : index
    %75 = vector.load %arg6[%c0_73, %c1_74, %c0_75] : memref<1x2x4xf32, #tpu.memory_space<vmem>>, vector<1x1x4xf32>
    %76 = vector.shape_cast %75 : vector<1x1x4xf32> to vector<1x4xf32>
    %77 = vector.shape_cast %74 : vector<1x4xf32> to vector<1x1x4xf32>
    tpu.vector_store %arg6[%c0_73, %c1_74, %c0_75], %77 {strides = array<i32>} : memref<1x2x4xf32, #tpu.memory_space<vmem>>, vector<1x1x4xf32>,
    %78 = vector.shape_cast %66 : vector<64x4xf32> to vector<8x8x4xf32>
    %c0_76 = arith.constant 0 : index
    %c0_77 = arith.constant 0 : index
    %c0_78 = arith.constant 0 : index
    %c0_79 = arith.constant 0 : index
    %79 = vector.load %arg5[%c0_76, %c0_77, %c0_78, %c0_79] : memref<1x8x8x4xf32, #tpu.memory_space<vmem>>, vector<1x8x8x4xf32>
    %80 = vector.shape_cast %79 : vector<1x8x8x4xf32> to vector<8x8x4xf32>
    %81 = vector.shape_cast %78 : vector<8x8x4xf32> to vector<1x8x8x4xf32>
    tpu.vector_store %arg5[%c0_76, %c0_77, %c0_78, %c0_79], %81 {strides = array<i32>} : memref<1x8x8x4xf32, #tpu.memory_space<vmem>>, vector<1x8x8x4xf32>,
    return
  }
  func.func @transform_0(%arg0: i32) -> (i32, i32, i32, i32) {
    %c0_i32 = arith.constant 0 : i32
    %c0_i32_0 = arith.constant 0 : i32
    %c0_i32_1 = arith.constant 0 : i32
    %c0_i32_2 = arith.constant 0 : i32
    return %arg0, %c0_i32, %c0_i32_0, %c0_i32_1 : i32, i32, i32, i32
  }
  func.func @transform_1(%arg0: i32) -> (i32, i32) {
    %c0_i32 = arith.constant 0 : i32
    %c0_i32_0 = arith.constant 0 : i32
    %c0_i32_1 = arith.constant 0 : i32
    return %c0_i32, %c0_i32_0 : i32, i32
  }
  func.func @transform_2(%arg0: i32) -> (i32, i32) {
    %c0_i32 = arith.constant 0 : i32
    %c0_i32_0 = arith.constant 0 : i32
    %c0_i32_1 = arith.constant 0 : i32
    return %c0_i32, %c0_i32_0 : i32, i32
  }
  func.func @transform_3(%arg0: i32) -> (i32, i32) {
    %c0_i32 = arith.constant 0 : i32
    %c0_i32_0 = arith.constant 0 : i32
    %c0_i32_1 = arith.constant 0 : i32
    return %c0_i32, %c0_i32_0 : i32, i32
  }
  func.func @transform_4(%arg0: i32) -> (i32, i32, i32, i32) {
    %c0_i32 = arith.constant 0 : i32
    %c0_i32_0 = arith.constant 0 : i32
    %c0_i32_1 = arith.constant 0 : i32
    %c0_i32_2 = arith.constant 0 : i32
    return %arg0, %c0_i32, %c0_i32_0, %c0_i32_1 : i32, i32, i32, i32
  }
  func.func @transform_5(%arg0: i32) -> (i32, i32, i32) {
    %c0_i32 = arith.constant 0 : i32
    %c0_i32_0 = arith.constant 0 : i32
    %c0_i32_1 = arith.constant 0 : i32
    return %arg0, %c0_i32, %c0_i32_0 : i32, i32, i32
  }
}

module attributes {stable_mosaic.version = 11 : i64} {
  func.func @_conv3_bn_residual_relu_kernel(%arg0: i32, %arg1: memref<128x4xf32, #tpu.memory_space<vmem>>, %arg2: memref<128x16xf32, #tpu.memory_space<vmem>>, %arg3: memref<1x4xf32, #tpu.memory_space<vmem>>, %arg4: memref<1x4xf32, #tpu.memory_space<vmem>>, %arg5: memref<4x16xf32, #tpu.memory_space<vmem>>, %arg6: memref<1x16xf32, #tpu.memory_space<vmem>>, %arg7: memref<1x16xf32, #tpu.memory_space<vmem>>, %arg8: memref<128x16xf32, #tpu.memory_space<vmem>>) attributes {dimension_semantics = [#tpu.dimension_semantics<parallel>], iteration_bounds = array<i64: 1>, scalar_prefetch = 0 : i64, scratch_operands = 0 : i64, tpu.core_type = #tpu.core_type<tc>, window_params = [{transform_indices = @transform_0, window_bounds = array<i64: 128, 4>}, {transform_indices = @transform_1, window_bounds = array<i64: 128, 16>}, {pipeline_mode = #tpu.pipeline_mode<synchronous>, transform_indices = @transform_2, window_bounds = array<i64: 1, 4>}, {pipeline_mode = #tpu.pipeline_mode<synchronous>, transform_indices = @transform_3, window_bounds = array<i64: 1, 4>}, {pipeline_mode = #tpu.pipeline_mode<synchronous>, transform_indices = @transform_4, window_bounds = array<i64: 4, 16>}, {pipeline_mode = #tpu.pipeline_mode<synchronous>, transform_indices = @transform_5, window_bounds = array<i64: 1, 16>}, {pipeline_mode = #tpu.pipeline_mode<synchronous>, transform_indices = @transform_6, window_bounds = array<i64: 1, 16>}, {transform_indices = @transform_7, window_bounds = array<i64: 128, 16>}]} {
    %c0 = arith.constant 0 : index
    %c0_0 = arith.constant 0 : index
    %0 = vector.load %arg1[%c0, %c0_0] : memref<128x4xf32, #tpu.memory_space<vmem>>, vector<128x4xf32>
    %c0_1 = arith.constant 0 : index
    %c0_2 = arith.constant 0 : index
    %1 = vector.load %arg3[%c0_1, %c0_2] : memref<1x4xf32, #tpu.memory_space<vmem>>, vector<1x4xf32>
    %2 = vector.broadcast %1 : vector<1x4xf32> to vector<128x4xf32>
    %3 = arith.mulf %0, %2 : vector<128x4xf32>
    %c0_3 = arith.constant 0 : index
    %c0_4 = arith.constant 0 : index
    %4 = vector.load %arg4[%c0_3, %c0_4] : memref<1x4xf32, #tpu.memory_space<vmem>>, vector<1x4xf32>
    %5 = vector.broadcast %4 : vector<1x4xf32> to vector<128x4xf32>
    %6 = arith.addf %3, %5 : vector<128x4xf32>
    %cst = arith.constant 0.000000e+00 : f32
    %7 = vector.broadcast %cst : f32 to vector<128x4xf32>
    %8 = arith.maximumf %6, %7 : vector<128x4xf32>
    %c0_5 = arith.constant 0 : index
    %c0_6 = arith.constant 0 : index
    %9 = vector.load %arg5[%c0_5, %c0_6] : memref<4x16xf32, #tpu.memory_space<vmem>>, vector<4x16xf32>
    %cst_7 = arith.constant dense<0.000000e+00> : vector<128x16xf32>
    %10 = tpu.matmul %8, %9, %cst_7 {dimension_numbers = #tpu.dot_dimension_numbers<[1], [0], [0], [1], [0, 0, 1, 1], [], []>} : vector<128x4xf32>, vector<4x16xf32>, vector<128x16xf32> -> vector<128x16xf32>
    %c0_8 = arith.constant 0 : index
    %c0_9 = arith.constant 0 : index
    %11 = vector.load %arg6[%c0_8, %c0_9] : memref<1x16xf32, #tpu.memory_space<vmem>>, vector<1x16xf32>
    %12 = vector.broadcast %11 : vector<1x16xf32> to vector<128x16xf32>
    %13 = arith.mulf %10, %12 : vector<128x16xf32>
    %c0_10 = arith.constant 0 : index
    %c0_11 = arith.constant 0 : index
    %14 = vector.load %arg7[%c0_10, %c0_11] : memref<1x16xf32, #tpu.memory_space<vmem>>, vector<1x16xf32>
    %15 = vector.broadcast %14 : vector<1x16xf32> to vector<128x16xf32>
    %16 = arith.addf %13, %15 : vector<128x16xf32>
    %c0_12 = arith.constant 0 : index
    %c0_13 = arith.constant 0 : index
    %17 = vector.load %arg2[%c0_12, %c0_13] : memref<128x16xf32, #tpu.memory_space<vmem>>, vector<128x16xf32>
    %18 = arith.addf %16, %17 : vector<128x16xf32>
    %cst_14 = arith.constant 0.000000e+00 : f32
    %19 = vector.broadcast %cst_14 : f32 to vector<128x16xf32>
    %20 = arith.maximumf %18, %19 : vector<128x16xf32>
    %c0_15 = arith.constant 0 : index
    %c0_16 = arith.constant 0 : index
    %21 = vector.load %arg8[%c0_15, %c0_16] : memref<128x16xf32, #tpu.memory_space<vmem>>, vector<128x16xf32>
    tpu.vector_store %arg8[%c0_15, %c0_16], %20 {strides = array<i32>} : memref<128x16xf32, #tpu.memory_space<vmem>>, vector<128x16xf32>,
    return
  }
  func.func @transform_0(%arg0: i32) -> (i32, i32) {
    %c0_i32 = arith.constant 0 : i32
    %c0_i32_0 = arith.constant 0 : i32
    return %arg0, %c0_i32 : i32, i32
  }
  func.func @transform_1(%arg0: i32) -> (i32, i32) {
    %c0_i32 = arith.constant 0 : i32
    %c0_i32_0 = arith.constant 0 : i32
    return %arg0, %c0_i32 : i32, i32
  }
  func.func @transform_2(%arg0: i32) -> (i32, i32) {
    %c0_i32 = arith.constant 0 : i32
    %c0_i32_0 = arith.constant 0 : i32
    %c0_i32_1 = arith.constant 0 : i32
    return %c0_i32, %c0_i32_0 : i32, i32
  }
  func.func @transform_3(%arg0: i32) -> (i32, i32) {
    %c0_i32 = arith.constant 0 : i32
    %c0_i32_0 = arith.constant 0 : i32
    %c0_i32_1 = arith.constant 0 : i32
    return %c0_i32, %c0_i32_0 : i32, i32
  }
  func.func @transform_4(%arg0: i32) -> (i32, i32) {
    %c0_i32 = arith.constant 0 : i32
    %c0_i32_0 = arith.constant 0 : i32
    %c0_i32_1 = arith.constant 0 : i32
    return %c0_i32, %c0_i32_0 : i32, i32
  }
  func.func @transform_5(%arg0: i32) -> (i32, i32) {
    %c0_i32 = arith.constant 0 : i32
    %c0_i32_0 = arith.constant 0 : i32
    %c0_i32_1 = arith.constant 0 : i32
    return %c0_i32, %c0_i32_0 : i32, i32
  }
  func.func @transform_6(%arg0: i32) -> (i32, i32) {
    %c0_i32 = arith.constant 0 : i32
    %c0_i32_0 = arith.constant 0 : i32
    %c0_i32_1 = arith.constant 0 : i32
    return %c0_i32, %c0_i32_0 : i32, i32
  }
  func.func @transform_7(%arg0: i32) -> (i32, i32) {
    %c0_i32 = arith.constant 0 : i32
    %c0_i32_0 = arith.constant 0 : i32
    return %arg0, %c0_i32 : i32, i32
  }
}

</mosaic_0001>

<bundles_post_ra>
// kernel: bottleneck_forward.4
= control target key start
LH: loop header
LB: loop body
LE: loop exit
PB: predicated region body
PF: predicated region fallthrough
CT: control target
= control target key end

     0   :  { %vm225_vm0 = vcmask 1043456   ;;  %s551_s1 = inlined_call_operand.vmem [shape: f32[512,128], index: 1, kind: input, shape index: {}]   ;;  %s552_s0 = inlined_call_operand.vmem [shape: f32[4,512], index: 0, kind: input, shape index: {}]   ;;  %s553_s2 = inlined_call_operand.vmem [shape: f32[4,128], index: 2, kind: output, shape index: {0}]   ;;  %s554_s3 = inlined_call_operand.vmem [shape: f32[1,2,128], index: 3, kind: output, shape index: {1}]  }
   0x1   :  { %v46_v0 = vld [vmem:[%s551_s1 + $0xf8] sm:$0xff]  ;;  %v45_v4 = vld [vmem:[%s551_s1 + $0xf0] sm:$0xff]  ;;  %v44_v8 = vld [vmem:[%s551_s1 + $0xe8] sm:$0xff] }
   0x2   :  { %v78_v1 = vld [vmem:[%s551_s1 + $0x1f8] sm:$0xff]  ;;  %252 = vmatprep.subr.mxu0 %v46_v0  ;;  %v77_v5 = vld [vmem:[%s551_s1 + $0x1f0] sm:$0xff]  ;;  %v76_v9 = vld [vmem:[%s551_s1 + $0x1e8] sm:$0xff] }
   0x3   :  { %v30_v2 = vld [vmem:[%s551_s1 + $0x78] sm:$0xff]  ;;  %287 = vmatprep.subr.mxu1 %v78_v1  ;;  %v29_v6 = vld [vmem:[%s551_s1 + $0x70] sm:$0xff]  ;;  %v28_v10 = vld [vmem:[%s551_s1 + $0x68] sm:$0xff] }
   0x4   :  { %v62_v3 = vld [vmem:[%s551_s1 + $0x178] sm:$0xff]  ;;  %253 = vmatpush3.msra.mxu0 %v30_v2  ;;  %v61_v7 = vld [vmem:[%s551_s1 + $0x170] sm:$0xff]  ;;  %v60_v11 = vld [vmem:[%s551_s1 + $0x168] sm:$0xff] }
   0x5   :  { %288 = vmatpush3.msra.mxu1 %v62_v3  ;;  %254 = vmatprep.subr.mxu0 %v45_v4  ;;  %v43_v12 = vld [vmem:[%s551_s1 + $0xe0] sm:$0xff]  ;;  %v42_v16 = vld [vmem:[%s551_s1 + $0xd8] sm:$0xff]  ;;  %v41_v20 = vld [vmem:[%s551_s1 + $0xd0] sm:$0xff] }
   0x6   :  { %289 = vmatprep.subr.mxu1 %v77_v5  ;;  %255 = vmatpush3.msra.mxu0 %v29_v6  ;;  %v75_v13 = vld [vmem:[%s551_s1 + $0x1e0] sm:$0xff]  ;;  %v74_v17 = vld [vmem:[%s551_s1 + $0x1d8] sm:$0xff]  ;;  %v73_v21 = vld [vmem:[%s551_s1 + $0x1d0] sm:$0xff] }
   0x7   :  { %290 = vmatpush3.msra.mxu1 %v61_v7  ;;  %256 = vmatprep.subr.mxu0 %v44_v8  ;;  %v27_v14 = vld [vmem:[%s551_s1 + $0x60] sm:$0xff]  ;;  %v26_v18 = vld [vmem:[%s551_s1 + $0x58] sm:$0xff]  ;;  %v25_v22 = vld [vmem:[%s551_s1 + $0x50] sm:$0xff] }
   0x8   :  { %291 = vmatprep.subr.mxu1 %v76_v9  ;;  %v59_v15 = vld [vmem:[%s551_s1 + $0x160] sm:$0xff]  ;;  %257 = vmatpush3.msra.mxu0 %v28_v10  ;;  %v58_v19 = vld [vmem:[%s551_s1 + $0x158] sm:$0xff]  ;;  %v57_v23 = vld [vmem:[%s551_s1 + $0x150] sm:$0xff] }
   0x9   :  { %292 = vmatpush3.msra.mxu1 %v60_v11  ;;  %258 = vmatprep.subr.mxu0 %v43_v12  ;;  %v40_v24 = vld [vmem:[%s551_s1 + $0xc8] sm:$0xff]  ;;  %v39_v28 = vld [vmem:[%s551_s1 + $0xc0] sm:$0xff]  ;;  %v38_v32 = vld [vmem:[%s551_s1 + $0xb8] sm:$0xff] }
   0xa   :  { %293 = vmatprep.subr.mxu1 %v75_v13  ;;  %259 = vmatpush3.msra.mxu0 %v27_v14  ;;  %v72_v25 = vld [vmem:[%s551_s1 + $0x1c8] sm:$0xff]  ;;  %v71_v29 = vld [vmem:[%s551_s1 + $0x1c0] sm:$0xff]  ;;  %v70_v33 = vld [vmem:[%s551_s1 + $0x1b8] sm:$0xff] }
   0xb   :  { %294 = vmatpush3.msra.mxu1 %v59_v15  ;;  %260 = vmatprep.subr.mxu0 %v42_v16  ;;  %v24_v26 = vld [vmem:[%s551_s1 + $0x48] sm:$0xff]  ;;  %v23_v30 = vld [vmem:[%s551_s1 + $0x40] sm:$0xff]  ;;  %v22_v34 = vld [vmem:[%s551_s1 + $0x38] sm:$0xff] }
   0xc   :  { %295 = vmatprep.subr.mxu1 %v74_v17  ;;  %261 = vmatpush3.msra.mxu0 %v26_v18  ;;  %v56_v27 = vld [vmem:[%s551_s1 + $0x148] sm:$0xff]  ;;  %v55_v31 = vld [vmem:[%s551_s1 + $0x140] sm:$0xff]  ;;  %v54_v35 = vld [vmem:[%s551_s1 + $0x138] sm:$0xff] }
   0xd   :  { %296 = vmatpush3.msra.mxu1 %v58_v19  ;;  %262 = vmatprep.subr.mxu0 %v41_v20  ;;  %v37_v36 = vld [vmem:[%s551_s1 + $0xb0] sm:$0xff]  ;;  %v36_v40 = vld [vmem:[%s551_s1 + $0xa8] sm:$0xff]  ;;  %v35_v44 = vld [vmem:[%s551_s1 + $0xa0] sm:$0xff] }
   0xe   :  { %297 = vmatprep.subr.mxu1 %v73_v21  ;;  %263 = vmatpush3.msra.mxu0 %v25_v22  ;;  %v69_v37 = vld [vmem:[%s551_s1 + $0x1b0] sm:$0xff]  ;;  %v68_v41 = vld [vmem:[%s551_s1 + $0x1a8] sm:$0xff]  ;;  %v67_v45 = vld [vmem:[%s551_s1 + $0x1a0] sm:$0xff] }
   0xf   :  { %298 = vmatpush3.msra.mxu1 %v57_v23  ;;  %264 = vmatprep.subr.mxu0 %v40_v24  ;;  %v21_v38 = vld [vmem:[%s551_s1 + $0x30] sm:$0xff]  ;;  %v20_v42 = vld [vmem:[%s551_s1 + $0x28] sm:$0xff]  ;;  %v19_v46 = vld [vmem:[%s551_s1 + $0x20] sm:$0xff] }
  0x10   :  { %299 = vmatprep.subr.mxu1 %v72_v25  ;;  %265 = vmatpush3.msra.mxu0 %v24_v26  ;;  %v53_v39 = vld [vmem:[%s551_s1 + $0x130] sm:$0xff]  ;;  %v52_v43 = vld [vmem:[%s551_s1 + $0x128] sm:$0xff]  ;;  %v51_v47 = vld [vmem:[%s551_s1 + $0x120] sm:$0xff] }
  0x11   :  { %300 = vmatpush3.msra.mxu1 %v56_v27  ;;  %266 = vmatprep.subr.mxu0 %v39_v28  ;;  %v34_v48 = vld [vmem:[%s551_s1 + $0x98] sm:$0xff]  ;;  %v33_v52 = vld [vmem:[%s551_s1 + $0x90] sm:$0xff]  ;;  %v13_v56 = vld [vmem:[%s552_s0] sm:$0xff] }
  0x12   :  { %301 = vmatprep.subr.mxu1 %v71_v29  ;;  %267 = vmatpush3.msra.mxu0 %v23_v30  ;;  %v66_v49 = vld [vmem:[%s551_s1 + $0x198] sm:$0xff]  ;;  %v65_v53 = vld [vmem:[%s551_s1 + $0x190] sm:$0xff]  ;;  %v32_v57 = vld [vmem:[%s551_s1 + $0x88] sm:$0xff]  ;;  %v81_v0 = vcombine.high %v13_v56, %v13_v56 }
  0x13   :  { %302 = vmatpush3.msra.mxu1 %v55_v31  ;;  %268 = vmatprep.subr.mxu0 %v38_v32  ;;  %v18_v50 = vld [vmem:[%s551_s1 + $0x18] sm:$0xff]  ;;  %v17_v54 = vld [vmem:[%s551_s1 + $0x10] sm:$0xff]  ;;  %v64_v58 = vld [vmem:[%s551_s1 + $0x188] sm:$0xff] }
  0x14   :  { %303 = vmatprep.subr.mxu1 %v70_v33  ;;  %269 = vmatpush3.msra.mxu0 %v22_v34  ;;  %v50_v51 = vld [vmem:[%s551_s1 + $0x118] sm:$0xff]  ;;  %v49_v55 = vld [vmem:[%s551_s1 + $0x110] sm:$0xff]  ;;  %v14_v59 = vld [vmem:[%s552_s0 + $0x8] sm:$0xff] }
  0x15   :  { %304 = vmatpush3.msra.mxu1 %v54_v35  ;;  %270 = vmatprep.subr.mxu0 %v37_v36  ;;  %v16_v60 = vld [vmem:[%s551_s1 + $0x8] sm:$0xff]  ;;  %v31_v62 = vld [vmem:[%s551_s1 + $0x80] sm:$0xff]  ;;  %v82_v2 = vcombine.high %v14_v59, %v14_v59 }
  0x16   :  { %305 = vmatprep.subr.mxu1 %v69_v37  ;;  %271 = vmatpush3.msra.mxu0 %v21_v38  ;;  %v48_v61 = vld [vmem:[%s551_s1 + $0x108] sm:$0xff]  ;;  %v63_v63 = vld [vmem:[%s551_s1 + $0x180] sm:$0xff] }
  0x17   :  { %306 = vmatpush3.msra.mxu1 %v53_v39  ;;  %272 = vmatprep.subr.mxu0 %v36_v40  ;;  %v15_v1 = vld [vmem:[%s551_s1] sm:$0xff] }
  0x18   :  { %307 = vmatprep.subr.mxu1 %v68_v41  ;;  %273 = vmatpush3.msra.mxu0 %v20_v42  ;;  %v47_v3 = vld [vmem:[%s551_s1 + $0x100] sm:$0xff] }
  0x19   :  { %308 = vmatpush3.msra.mxu1 %v52_v43  ;;  %274 = vmatprep.subr.mxu0 %v35_v44 }
  0x1a   :  { %309 = vmatprep.subr.mxu1 %v67_v45  ;;  %275 = vmatpush3.msra.mxu0 %v19_v46 }
  0x1b   :  { %310 = vmatpush3.msra.mxu1 %v51_v47  ;;  %276 = vmatprep.subr.mxu0 %v34_v48 }
  0x1c   :  { %311 = vmatprep.subr.mxu1 %v66_v49  ;;  %277 = vmatpush3.msra.mxu0 %v18_v50 }
  0x1d   :  { %312 = vmatpush3.msra.mxu1 %v50_v51  ;;  %278 = vmatprep.subr.mxu0 %v33_v52 }
  0x1e   :  { %313 = vmatprep.subr.mxu1 %v65_v53  ;;  %279 = vmatpush3.msra.mxu0 %v17_v54 }
  0x1f   :  { %314 = vmatpush3.msra.mxu1 %v49_v55  ;;  %280 = vmatprep.subr.mxu0 %v32_v57 }
  0x20   :  { %315 = vmatprep.subr.mxu1 %v64_v58  ;;  %281 = vmatpush3.msra.mxu0 %v16_v60 }
  0x21   :  { %316 = vmatpush3.msra.mxu1 %v48_v61  ;;  %282 = vmatprep.subr.mxu0 %v31_v62 }
  0x22   :  { %317 = vmatprep.subr.mxu1 %v63_v63  ;;  %283 = vmatpush3.msra.mxu0 %v15_v1 }
  0x23   :  { %149 = vmatprep.mubr.f32.mxu0 %v81_v0  ;;  %318 = vmatpush3.msra.mxu1 %v47_v3 }
  0x24   :  { %219 = vmatprep.mubr.f32.mxu1 %v82_v2  ;;  %150 = vmatmul.mubr.f32.vlgmr.msra.gmra.mxu0 %v13_v56 }
  0x25   :  { %220 = vmatmul.mubr.f32.vlgmr.msra.gmra.mxu1 %v14_v59 }
  0xe4   :  { %v284_v4 = vpop.f32.mrf.mxu0 }
  0xe5   :  { %v319_v5 = vpop.f32.mrf.mxu1 }
  0xe6   :  { %v285_v6 = vpop.f32.mrf.mxu0 }
  0xe7   :  { %v320_v7 = vpop.f32.mrf.mxu1  ;;  %v286_v8 = vadd.f32 %v285_v6, %v284_v4 }
  0xe8   :  { %v321_v9 = vadd.f32 %v320_v7, %v319_v5 }
  0xea   :  { %v222_v10 = vadd.f32 %v321_v9, %v286_v8 }
  0xec   :  { %v226_v11 = vsel %vm225_vm0, %v222_v10, 0.0  ;;  %v234_v12 = vmul.f32 %v222_v10, %v222_v10  ;;  %243 = vst [vmem:[%s553_s2] sm:$0xf] %v222_v10 }
  0xed   :  { %v227_v13 = vrot.slane %v226_v11, 4 }
  0xee   :  { %v235_v14 = vsel %vm225_vm0, %v234_v12, 0.0 }
  0xef   :  { %v228_v15 = vadd.f32 %v227_v13, %v226_v11  ;;  %v236_v16 = vrot.slane %v235_v14, 4 }
  0xf1   :  { %v229_v17 = vrot.slane %v228_v15, 2  ;;  %v237_v18 = vadd.f32 %v236_v16, %v235_v14 }
  0xf3   :  { %v230_v19 = vadd.f32 %v229_v17, %v228_v15  ;;  %v238_v20 = vrot.slane %v237_v18, 2 }
  0xf5   :  { %v231_v21 = vrot.slane %v230_v19, 1  ;;  %v239_v22 = vadd.f32 %v238_v20, %v237_v18 }
  0xf7   :  { %v232_v23 = vadd.f32 %v231_v21, %v230_v19  ;;  %v240_v24 = vrot.slane %v239_v22, 1 }
  0xf9   :  { %233 = vst [vmem:[%s554_s3] sm:$0x1] %v232_v23  ;;  %v241_v25 = vadd.f32 %v240_v24, %v239_v22 }
  0xfb   :  { %242 = vst [vmem:[%s554_s3 + $0x1] sm:$0x1] %v241_v25 }

// kernel: bottleneck_forward.6
= control target key start
LH: loop header
LB: loop body
LE: loop exit
PB: predicated region body
PF: predicated region fallthrough
CT: control target
= control target key end

     0   :  { %vm145_vm0 = vcmask 1043456   ;;  %vm96_vm1 = vcmask 31744   ;;  %vm294_vm2 = vcmask 130048   ;;  %vm332_vm3 = vcmask 122880   ;;  %s632_s3 = inlined_call_operand.vmem [shape: f32[4,16], index: 3, kind: input, shape index: {}]   ;;  %s633_s0 = inlined_call_operand.vmem [shape: f32[128,4], index: 0, kind: input, shape index: {}]   ;;  %s634_s1 = inlined_call_operand.vmem [shape: f32[1,4], index: 1, kind: input, shape index: {}]   ;;  %s635_s2 = inlined_call_operand.vmem [shape: f32[1,4], index: 2, kind: input, shape index: {}]   ;;  %s636_s4 = inlined_call_operand.vmem [shape: f32[1,2,16], index: 4, kind: output, shape index: {}]  }
   0x1   :  { %v95_v0 = vld [vmem:[%s632_s3] sm:$0xf]  ;;  %v18_v5 = vld [vmem:[%s633_s0 + $0x8] sm:$0xff]  ;;  %v19_v6 = vld [vmem:[%s633_s0 + $0x10] sm:$0xff] }
   0x2   :  { %v17_v1 = vld [vmem:[%s633_s0] sm:$0xff]  ;;  %428 = vmatprep.subr.msk.mxu0 %vm145_vm0, %v95_v0  ;;  %454 = vmatprep.subr.msk.mxu1 %vm145_vm0, %v95_v0  ;;  %v20_v9 = vld [vmem:[%s633_s0 + $0x18] sm:$0xff]  ;;  %v22_v11 = vld [vmem:[%s633_s0 + $0x28] sm:$0xff] }
   0x3   :  { %v490_v2 = vld [vmem:[%s634_s1] ss:$0 sm:$0xff]  ;;  %429 = vmatpush3.msk.msra.mxu0 %vm145_vm0, %v95_v0  ;;  %455 = vmatpush3.msk.msra.mxu1 %vm145_vm0, %v95_v0  ;;  %v23_v16 = vld [vmem:[%s633_s0 + $0x30] sm:$0xff]  ;;  %v24_v20 = vld [vmem:[%s633_s0 + $0x38] sm:$0xff] }
   0x4   :  { %v40_v3 = vmul.f32 %v490_v2, %v17_v1  ;;  %v497_v4 = vld [vmem:[%s635_s2] ss:$0 sm:$0xff]  ;;  %v41_v7 = vmul.f32 %v490_v2, %v18_v5  ;;  %v42_v8 = vmul.f32 %v490_v2, %v19_v6  ;;  %v43_v13 = vmul.f32 %v490_v2, %v20_v9  ;;  %v26_v25 = vld [vmem:[%s633_s0 + $0x48] sm:$0xff]  ;;  %v27_v26 = vld [vmem:[%s633_s0 + $0x50] sm:$0xff] }
   0x5   :  { %v21_v10 = vld [vmem:[%s633_s0 + $0x20] sm:$0xff]  ;;  %v45_v15 = vmul.f32 %v490_v2, %v22_v11  ;;  %v46_v19 = vmul.f32 %v490_v2, %v23_v16  ;;  %v28_v29 = vld [vmem:[%s633_s0 + $0x58] sm:$0xff]  ;;  %v47_v32 = vmul.f32 %v490_v2, %v24_v20  ;;  %v30_v34 = vld [vmem:[%s633_s0 + $0x68] sm:$0xff]  ;;  %v49_v37 = vmul.f32 %v490_v2, %v26_v25 }
   0x6   :  { %v63_v12 = vadd.f32 %v497_v4, %v40_v3  ;;  %v44_v14 = vmul.f32 %v490_v2, %v21_v10  ;;  %v64_v17 = vadd.f32 %v497_v4, %v41_v7  ;;  %v65_v18 = vadd.f32 %v497_v4, %v42_v8  ;;  %v25_v21 = vld [vmem:[%s633_s0 + $0x40] sm:$0xff]  ;;  %v31_v39 = vld [vmem:[%s633_s0 + $0x70] sm:$0xff]  ;;  %v32_v51 = vld [vmem:[%s633_s0 + $0x78] sm:$0xff] }
   0x7   :  { %v66_v23 = vadd.f32 %v497_v4, %v43_v13  ;;  %v29_v30 = vld [vmem:[%s633_s0 + $0x60] sm:$0xff]  ;;  %v68_v31 = vadd.f32 %v497_v4, %v45_v15  ;;  %v48_v33 = vmul.f32 %v490_v2, %v25_v21  ;;  %v69_v36 = vadd.f32 %v497_v4, %v46_v19 }
   0x8   :  { %v79_v22 = vmax.f32 %v63_v12, 0.0  ;;  %v67_v24 = vadd.f32 %v497_v4, %v44_v14  ;;  %v80_v27 = vmax.f32 %v64_v17, 0.0  ;;  %v81_v28 = vmax.f32 %v65_v18, 0.0 }
   0x9   :  { %v82_v35 = vmax.f32 %v66_v23, 0.0  ;;  %v50_v38 = vmul.f32 %v490_v2, %v27_v26  ;;  %v71_v41 = vadd.f32 %v497_v4, %v48_v33  ;;  %v51_v42 = vmul.f32 %v490_v2, %v28_v29 }
   0xa   :  { %430 = vmatprep.mubr.msk.f32.mxu0 %vm96_vm1, %v79_v22  ;;  %v83_v40 = vmax.f32 %v67_v24, 0.0  ;;  %v52_v43 = vmul.f32 %v490_v2, %v29_v30  ;;  %v72_v44 = vadd.f32 %v497_v4, %v49_v37  ;;  %v53_v46 = vmul.f32 %v490_v2, %v30_v34 }
   0xb   :  { %431 = vmatmul.mubr.msk.f32.vlgmr.msra.gmra.mxu0 %vm96_vm1, %v80_v27  ;;  %v73_v45 = vadd.f32 %v497_v4, %v50_v38  ;;  %v87_v47 = vmax.f32 %v71_v41, 0.0  ;;  %v74_v48 = vadd.f32 %v497_v4, %v51_v42  ;;  %v54_v50 = vmul.f32 %v490_v2, %v31_v39 }
   0xc   :  { %433 = vmatprep.mubr.msk.f32.mxu0 %vm96_vm1, %v81_v28  ;;  %v75_v49 = vadd.f32 %v497_v4, %v52_v43  ;;  %v84_v52 = vmax.f32 %v68_v31, 0.0  ;;  %v70_v53 = vadd.f32 %v497_v4, %v47_v32  ;;  %v88_v54 = vmax.f32 %v72_v44, 0.0 }
   0xd   :  { %v89_v55 = vmax.f32 %v73_v45, 0.0  ;;  %v85_v56 = vmax.f32 %v69_v36, 0.0  ;;  %442 = vmatprep.mubr.msk.f32.mxu1 %vm96_vm1, %v87_v47  ;;  %v90_v57 = vmax.f32 %v74_v48, 0.0  ;;  %v76_v58 = vadd.f32 %v497_v4, %v53_v46 }
   0xe   :  { %443 = vmatmul.mubr.msk.f32.vlgmr.msra.gmra.mxu1 %vm96_vm1, %v88_v54  ;;  %v55_v59 = vmul.f32 %v490_v2, %v32_v51  ;;  %v91_v60 = vmax.f32 %v75_v49, 0.0  ;;  %v77_v61 = vadd.f32 %v497_v4, %v54_v50  ;;  %v86_v62 = vmax.f32 %v70_v53, 0.0 }
   0xf   :  { %434 = vmatmul.mubr.msk.f32.gmra.mxu0 %vm96_vm1, %v82_v35  ;;  %445 = vmatprep.mubr.msk.f32.mxu1 %vm96_vm1, %v89_v55  ;;  %v92_v63 = vmax.f32 %v76_v58, 0.0 }
  0x10   :  { %436 = vmatprep.mubr.msk.f32.mxu0 %vm96_vm1, %v83_v40  ;;  %v78_v0 = vadd.f32 %v497_v4, %v55_v59  ;;  %v93_v1 = vmax.f32 %v77_v61, 0.0 }
  0x12   :  { %446 = vmatmul.mubr.msk.f32.gmra.mxu1 %vm96_vm1, %v90_v57  ;;  %v94_v2 = vmax.f32 %v78_v0, 0.0 }
  0x13   :  { %437 = vmatmul.mubr.msk.f32.gmra.mxu0 %vm96_vm1, %v84_v52  ;;  %448 = vmatprep.mubr.msk.f32.mxu1 %vm96_vm1, %v91_v60 }
  0x14   :  { %439 = vmatprep.mubr.msk.f32.mxu0 %vm96_vm1, %v85_v56 }
  0x16   :  { %449 = vmatmul.mubr.msk.f32.gmra.mxu1 %vm96_vm1, %v92_v63 }
  0x17   :  { %440 = vmatmul.mubr.msk.f32.gmra.mxu0 %vm96_vm1, %v86_v62  ;;  %451 = vmatprep.mubr.msk.f32.mxu1 %vm96_vm1, %v93_v1 }
  0x1a   :  { %452 = vmatmul.mubr.msk.f32.gmra.mxu1 %vm96_vm1, %v94_v2 }
  0xcb   :  { %v432_v3 = vpop.f32.mrf.mxu0 }
  0xcc   :  { %v335_v6 = vmul.f32 %v432_v3, %v432_v3  ;;  %v296_v9 = vsel %vm294_vm2, %v432_v3, 0.0 }
  0xcd   :  { %v215_v5 = vpop.f32.mrf.mxu0 }
  0xce   :  { %v295_v7 = vsel %vm294_vm2, %v215_v5, 0.0  ;;  %v334_v8 = vmul.f32 %v215_v5, %v215_v5  ;;  %v444_v13 = vpop.f32.mrf.mxu1  ;;  %v351_v14 = vsel %vm294_vm2, %v335_v6, 0.0 }
  0xcf   :  { %v435_v4 = vpop.f32.mrf.mxu0  ;;  %v297_v11 = vadd.f32 %v296_v9, %v295_v7  ;;  %v343_v55 = vmul.f32 %v444_v13, %v444_v13  ;;  %v312_v59 = vsel %vm294_vm2, %v444_v13, 0.0 }
  0xd0   :  { %v350_v10 = vsel %vm294_vm2, %v334_v8, 0.0  ;;  %v337_v15 = vmul.f32 %v435_v4, %v435_v4  ;;  %v255_v21 = vpop.f32.mrf.mxu1  ;;  %v300_v22 = vsel %vm294_vm2, %v435_v4, 0.0 }
  0xd1   :  { %v225_v12 = vpop.f32.mrf.mxu0  ;;  %v352_v18 = vadd.f32 %v351_v14, %v350_v10  ;;  %v342_v50 = vmul.f32 %v255_v21, %v255_v21  ;;  %v310_v56 = vsel %vm294_vm2, %v255_v21, 0.0  ;;  %v367_v1 = vsel %vm294_vm2, %v343_v55, 0.0 }
  0xd2   :  { %v298_v16 = vsel %vm294_vm2, %v225_v12, 0.0  ;;  %v336_v17 = vmul.f32 %v225_v12, %v225_v12  ;;  %v447_v27 = vpop.f32.mrf.mxu1  ;;  %v355_v28 = vsel %vm294_vm2, %v337_v15, 0.0 }
  0xd3   :  { %v299_v19 = vadd.f32 %v298_v16, %v297_v11  ;;  %v438_v20 = vpop.f32.mrf.mxu0  ;;  %v365_v60 = vsel %vm294_vm2, %v342_v50, 0.0  ;;  %v345_v2 = vmul.f32 %v447_v27, %v447_v27  ;;  %v316_v7 = vsel %vm294_vm2, %v447_v27, 0.0 }
  0xd4   :  { %v353_v23 = vsel %vm294_vm2, %v336_v17, 0.0  ;;  %v339_v29 = vmul.f32 %v438_v20, %v438_v20  ;;  %v265_v35 = vpop.f32.mrf.mxu1  ;;  %v304_v36 = vsel %vm294_vm2, %v438_v20, 0.0 }
  0xd5   :  { %v354_v24 = vadd.f32 %v353_v23, %v352_v18  ;;  %v235_v25 = vpop.f32.mrf.mxu0  ;;  %v301_v26 = vadd.f32 %v300_v22, %v299_v19  ;;  %v344_v61 = vmul.f32 %v265_v35, %v265_v35  ;;  %v314_v3 = vsel %vm294_vm2, %v265_v35, 0.0 }
  0xd6   :  { %v302_v30 = vsel %vm294_vm2, %v235_v25, 0.0  ;;  %v338_v31 = vmul.f32 %v235_v25, %v235_v25  ;;  %v450_v41 = vpop.f32.mrf.mxu1  ;;  %v359_v42 = vsel %vm294_vm2, %v339_v29, 0.0  ;;  %v371_v12 = vsel %vm294_vm2, %v345_v2, 0.0 }
  0xd7   :  { %v303_v32 = vadd.f32 %v302_v30, %v301_v26  ;;  %v356_v33 = vadd.f32 %v355_v28, %v354_v24  ;;  %v441_v34 = vpop.f32.mrf.mxu0  ;;  %v369_v8 = vsel %vm294_vm2, %v344_v61, 0.0  ;;  %v347_v13 = vmul.f32 %v450_v41, %v450_v41 }
  0xd8   :  { %v357_v37 = vsel %vm294_vm2, %v338_v31, 0.0  ;;  %v341_v43 = vmul.f32 %v441_v34, %v441_v34  ;;  %v308_v48 = vsel %vm294_vm2, %v441_v34, 0.0  ;;  %v275_v53 = vpop.f32.mrf.mxu1  ;;  %v320_v17 = vsel %vm294_vm2, %v450_v41, 0.0 }
  0xd9   :  { %v358_v38 = vadd.f32 %v357_v37, %v356_v33  ;;  %v245_v39 = vpop.f32.mrf.mxu0  ;;  %v305_v40 = vadd.f32 %v304_v36, %v303_v32  ;;  %v346_v4 = vmul.f32 %v275_v53, %v275_v53  ;;  %v318_v14 = vsel %vm294_vm2, %v275_v53, 0.0 }
  0xda   :  { %v306_v44 = vsel %vm294_vm2, %v245_v39, 0.0  ;;  %v340_v45 = vmul.f32 %v245_v39, %v245_v39  ;;  %v363_v54 = vsel %vm294_vm2, %v341_v43, 0.0  ;;  %v453_v0 = vpop.f32.mrf.mxu1  ;;  %v375_v22 = vsel %vm294_vm2, %v347_v13, 0.0 }
  0xdb   :  { %v307_v46 = vadd.f32 %v306_v44, %v305_v40  ;;  %v360_v47 = vadd.f32 %v359_v42, %v358_v38  ;;  %v373_v18 = vsel %vm294_vm2, %v346_v4, 0.0  ;;  %v349_v23 = vmul.f32 %v453_v0, %v453_v0 }
  0xdc   :  { %v361_v49 = vsel %vm294_vm2, %v340_v45, 0.0  ;;  %v285_v11 = vpop.f32.mrf.mxu1  ;;  %v324_v27 = vsel %vm294_vm2, %v453_v0, 0.0 }
  0xdd   :  { %v309_v51 = vadd.f32 %v308_v48, %v307_v46  ;;  %v362_v52 = vadd.f32 %v361_v49, %v360_v47  ;;  %v348_v19 = vmul.f32 %v285_v11, %v285_v11  ;;  %v322_v24 = vsel %vm294_vm2, %v285_v11, 0.0 }
  0xde   :  { %v379_v31 = vsel %vm294_vm2, %v349_v23, 0.0 }
  0xdf   :  { %v364_v57 = vadd.f32 %v363_v54, %v362_v52  ;;  %v311_v58 = vadd.f32 %v310_v56, %v309_v51  ;;  %v377_v28 = vsel %vm294_vm2, %v348_v19, 0.0 }
  0xe1   :  { %v366_v62 = vadd.f32 %v365_v60, %v364_v57  ;;  %v313_v63 = vadd.f32 %v312_v59, %v311_v58 }
  0xe3   :  { %v315_v5 = vadd.f32 %v314_v3, %v313_v63  ;;  %v368_v6 = vadd.f32 %v367_v1, %v366_v62 }
  0xe5   :  { %v370_v9 = vadd.f32 %v369_v8, %v368_v6  ;;  %v317_v10 = vadd.f32 %v316_v7, %v315_v5 }
  0xe7   :  { %v319_v15 = vadd.f32 %v318_v14, %v317_v10  ;;  %v372_v16 = vadd.f32 %v371_v12, %v370_v9 }
  0xe9   :  { %v374_v20 = vadd.f32 %v373_v18, %v372_v16  ;;  %v321_v21 = vadd.f32 %v320_v17, %v319_v15 }
  0xeb   :  { %v323_v25 = vadd.f32 %v322_v24, %v321_v21  ;;  %v376_v26 = vadd.f32 %v375_v22, %v374_v20 }
  0xed   :  { %v325_v29 = vadd.f32 %v324_v27, %v323_v25  ;;  %v378_v30 = vadd.f32 %v377_v28, %v376_v26 }
  0xef   :  { %v326_v32 = vrot.slane %v325_v29, 4  ;;  %v380_v33 = vadd.f32 %v379_v31, %v378_v30 }
  0xf1   :  { %v327_v34 = vadd.f32 %v326_v32, %v325_v29  ;;  %v381_v35 = vrot.slane %v380_v33, 4 }
  0xf3   :  { %v328_v36 = vrot.slane %v327_v34, 2  ;;  %v382_v37 = vadd.f32 %v381_v35, %v380_v33 }
  0xf5   :  { %v329_v38 = vadd.f32 %v328_v36, %v327_v34  ;;  %v383_v39 = vrot.slane %v382_v37, 2 }
  0xf7   :  { %v330_v40 = vrot.slane %v329_v38, 1  ;;  %v384_v41 = vadd.f32 %v383_v39, %v382_v37 }
  0xf9   :  { %v331_v42 = vadd.f32 %v330_v40, %v329_v38  ;;  %v385_v43 = vrot.slane %v384_v41, 1 }
  0xfb   :  { %333 = vst.msk [vmem:[%s636_s4] sm:$0x1] %vm332_vm3, %v331_v42  ;;  %v386_v44 = vadd.f32 %v385_v43, %v384_v41 }
  0xfd   :  { %387 = vst.msk [vmem:[%s636_s4 + $0x1] sm:$0x1] %vm332_vm3, %v386_v44 }

// kernel: bottleneck_forward.5
= control target key start
LH: loop header
LB: loop body
LE: loop exit
PB: predicated region body
PF: predicated region fallthrough
CT: control target
= control target key end

     0   :  { %s2146_s18 = smov 0   ;;  %s2453_s0 = inlined_call_operand.vmem [shape: f32[2,8,8,4], index: 0, kind: input, shape index: {}]   ;;  %s2454_s1 = inlined_call_operand.vmem [shape: f32[1,4], index: 1, kind: input, shape index: {}]   ;;  %s2455_s2 = inlined_call_operand.vmem [shape: f32[1,4], index: 2, kind: input, shape index: {}]   ;;  %s2456_s3 = inlined_call_operand.vmem [shape: f32[36,4], index: 3, kind: input, shape index: {}]   ;;  %s2457_s4 = inlined_call_operand.vmem [shape: f32[2,8,8,4], index: 4, kind: output, shape index: {0}]   ;;  %s2458_s5 = inlined_call_operand.vmem [shape: f32[2,2,4], index: 5, kind: output, shape index: {1}]  }
   0x1 LB: > { %s1792_s19 = sadd.s32 4294967295, %s2113_s18   ;;  %p1796_p0 = scmp.ge.s32.totalorder %s2113_s18, 1  ;;  %s2113_s18 = sphi %s2146_s18, %s16_s18  }
   0x2   : > { %p190_p1 = scmp.lt.s32.totalorder %s2113_s18, 3 }
   0x4   : > { %p191_p2 = pnand %p1796_p0, %p190_p1 }
   0x5   : > { %p2163_p3 = scmp.lt.s32.totalorder (!%p191_p2), %s1792_s19, 1 }
   0x6   : > { %194 = sbr.rel (%p191_p2) target bundleno = 321 (0x141), region = 36 }
   0xb   : > { %v336_v0 = vld [vmem:[%s2456_s3 + $0x4] sm:$0xf]  ;;  %vm361_vm0 = vcmask 1043456   ;;  %vm282_vm1 = vcmask 31744   ;;  %vm284_vm2 = vcmask 25600   ;;  %v2115_v1 = vmov 0.0  }
   0xc   : > { %2096 = vmatprep.subr.msk.mxu1 %vm361_vm0, %v336_v0  ;;  %1970 = vmatprep.subr.msk.mxu0 %vm361_vm0, %v336_v0  ;;  %283 = vst.msk [vmem:[#allocation2] sm:$0xff] %vm282_vm1, %v2115_v1  ;;  %vm289_vm3 = vcmask 24576   ;;  %287 = vst.msk [vmem:[#allocation2 + $0x90] sm:$0xff] %vm282_vm1, %v2115_v1  ;;  %v2192_v2 = vld [vmem:[%s2456_s3] sm:$0xf]  ;;  %s2461_s19 = smov (!%p2163_p3, %s1792_s19), 1 }
   0xd   : > { %285 = vst.msk [vmem:[#allocation2 + $0x8] sm:$0x3] %vm284_vm2, %v2115_v1  ;;  %288 = vst.msk [vmem:[#allocation2 + $0x98] sm:$0x3] %vm284_vm2, %v2115_v1  ;;  %2097 = vmatpush3.msk.msra.mxu1 %vm361_vm0, %v336_v0  ;;  %1971 = vmatpush3.msk.msra.mxu0 %vm361_vm0, %v336_v0  ;;  %v610_v3 = vld [vmem:[%s2456_s3 + $0x8] sm:$0xf] }
   0xe   : > { %300 = vst.msk [vmem:[#allocation2 + $0x9] sm:$0x1] %vm289_vm3, %v2115_v1  ;;  %290 = vst.msk [vmem:[#allocation2] sm:$0x1] %vm289_vm3, %v2115_v1  ;;  %1984 = vmatprep.subr.msk.mxu1 %vm361_vm0, %v2192_v2  ;;  %1998 = vmatprep.subr.msk.mxu0 %vm361_vm0, %v610_v3  ;;  %s1887_s27 = sshll.u32 %s2461_s19, 6 }
   0xf   : > { %291 = vst.msk [vmem:[#allocation2 + $0x10] sm:$0x1] %vm289_vm3, %v2115_v1  ;;  %292 = vst.msk [vmem:[#allocation2 + $0x20] sm:$0x1] %vm289_vm3, %v2115_v1  ;;  %v1802_v4 = vld [vmem:[%s2454_s1] ss:$0 sm:$0xff]  ;;  %s226_s7 = scalar_lea.vmem %s2453_s0, %s1887_s27  ;;  %s2406_s26 = scalar_lea.vmem %s2457_s4, %s1887_s27 }
  0x10   : > { %293 = vst.msk [vmem:[#allocation2 + $0x30] sm:$0x1] %vm289_vm3, %v2115_v1  ;;  %294 = vst.msk [vmem:[#allocation2 + $0x40] sm:$0x1] %vm289_vm3, %v2115_v1  ;;  %v1803_v5 = vld [vmem:[%s2455_s2] ss:$0 sm:$0xff] }
  0x11   : > { %295 = vst.msk [vmem:[#allocation2 + $0x50] sm:$0x1] %vm289_vm3, %v2115_v1  ;;  %296 = vst.msk [vmem:[#allocation2 + $0x60] sm:$0x1] %vm289_vm3, %v2115_v1  ;;  %v239_v6 = vld [vmem:[%s226_s7 + $0x18] sm:$0xff]  ;;  %v236_v7 = vld [vmem:[%s226_s7] sm:$0xff] }
  0x12   : > { %297 = vst.msk [vmem:[#allocation2 + $0x70] sm:$0x1] %vm289_vm3, %v2115_v1  ;;  %298 = vst.msk [vmem:[#allocation2 + $0x80] sm:$0x1] %vm289_vm3, %v2115_v1  ;;  %v240_v8 = vld [vmem:[%s226_s7 + $0x20] sm:$0xff]  ;;  %v254_v10 = vmul.f32 %v1802_v4, %v239_v6  ;;  %v251_v11 = vmul.f32 %v1802_v4, %v236_v7  ;;  %v237_v13 = vld [vmem:[%s226_s7 + $0x8] sm:$0xff] }
  0x13   : > { %301 = vst.msk [vmem:[#allocation2 + $0x19] sm:$0x1] %vm289_vm3, %v2115_v1  ;;  %302 = vst.msk [vmem:[#allocation2 + $0x29] sm:$0x1] %vm289_vm3, %v2115_v1  ;;  %v255_v12 = vmul.f32 %v1802_v4, %v240_v8  ;;  %v241_v14 = vld [vmem:[%s226_s7 + $0x28] sm:$0xff]  ;;  %v252_v15 = vmul.f32 %v1802_v4, %v237_v13  ;;  %v238_v17 = vld [vmem:[%s226_s7 + $0x10] sm:$0xff] }
  0x14   : > { %303 = vst.msk [vmem:[#allocation2 + $0x39] sm:$0x1] %vm289_vm3, %v2115_v1  ;;  %304 = vst.msk [vmem:[#allocation2 + $0x49] sm:$0x1] %vm289_vm3, %v2115_v1  ;;  %v328_v9 = vld [vmem:[#allocation2 + $0x1] sm:$0xff]  ;;  %v256_v16 = vmul.f32 %v1802_v4, %v241_v14  ;;  %v242_v18 = vld [vmem:[%s226_s7 + $0x30] sm:$0xff]  ;;  %v269_v19 = vadd.f32 %v1803_v5, %v254_v10  ;;  %v266_v20 = vadd.f32 %v1803_v5, %v251_v11 }
  0x15   : > { %305 = vst.msk [vmem:[#allocation2 + $0x59] sm:$0x1] %vm289_vm3, %v2115_v1  ;;  %306 = vst.msk [vmem:[#allocation2 + $0x69] sm:$0x1] %vm289_vm3, %v2115_v1  ;;  %1972 = vmatprep.mubr.msk.f32.mxu0 %vm282_vm1, %v328_v9  ;;  %v270_v21 = vadd.f32 %v1803_v5, %v255_v12  ;;  %v253_v22 = vmul.f32 %v1802_v4, %v238_v17  ;;  %v243_v23 = vld [vmem:[%s226_s7 + $0x38] sm:$0xff]  ;;  %v267_v24 = vadd.f32 %v1803_v5, %v252_v15  ;;  %v602_v48 = vld [vmem:[#allocation2 + $0x2] sm:$0xff] }
  0x16   : > { %307 = vst.msk [vmem:[#allocation2 + $0x79] sm:$0x1] %vm289_vm3, %v2115_v1  ;;  %308 = vst.msk [vmem:[#allocation2 + $0x89] sm:$0x1] %vm289_vm3, %v2115_v1  ;;  %v271_v25 = vadd.f32 %v1803_v5, %v256_v16  ;;  %v257_v26 = vmul.f32 %v1802_v4, %v242_v18  ;;  %v258_v27 = vmul.f32 %v1802_v4, %v243_v23  ;;  %v277_v28 = vmax.f32 %v269_v19, 0.0  ;;  %v319_v49 = vld [vmem:[#allocation2] sm:$0xff] }
  0x17   : > { %309 = vst.msk [vmem:[#allocation2 + $0x99] sm:$0x1] %vm289_vm3, %v2115_v1  ;;  %299 = vst.msk [vmem:[#allocation2 + $0x90] sm:$0x1] %vm289_vm3, %v2115_v1  ;;  %v274_v29 = vmax.f32 %v266_v20, 0.0  ;;  %v278_v30 = vmax.f32 %v270_v21, 0.0  ;;  %v268_v31 = vadd.f32 %v1803_v5, %v253_v22 }
  0x18   : > { %v275_v32 = vmax.f32 %v267_v24, 0.0  ;;  %v279_v33 = vmax.f32 %v271_v25, 0.0  ;;  %v272_v34 = vadd.f32 %v1803_v5, %v257_v26  ;;  %v273_v35 = vadd.f32 %v1803_v5, %v258_v27  ;;  %314 = vst.msk [vmem:[#allocation2 + $0x41] sm:$0xff] %vm282_vm1, %v277_v28  ;;  %v759_v44 = vld [vmem:[%s2456_s3 + $0xc] sm:$0xf]  ;;  %v1355_v9 = vld [vmem:[#allocation2 + $0x91] sm:$0xff] }
  0x19   : > { %311 = vst.msk [vmem:[#allocation2 + $0x11] sm:$0xff] %vm282_vm1, %v274_v29  ;;  %315 = vst.msk [vmem:[#allocation2 + $0x51] sm:$0xff] %vm282_vm1, %v278_v30  ;;  %v276_v36 = vmax.f32 %v268_v31, 0.0  ;;  %v908_v46 = vld [vmem:[%s2456_s3 + $0x10] sm:$0xf]  ;;  %s1801_s27 = sshll.u32 %s2461_s19, 1 }
  0x1a   : > { %312 = vst.msk [vmem:[#allocation2 + $0x21] sm:$0xff] %vm282_vm1, %v275_v32  ;;  %316 = vst.msk [vmem:[#allocation2 + $0x61] sm:$0xff] %vm282_vm1, %v279_v33  ;;  %v280_v37 = vmax.f32 %v272_v34, 0.0  ;;  %v281_v38 = vmax.f32 %v273_v35, 0.0  ;;  %v1057_v54 = vld [vmem:[%s2456_s3 + $0x14] sm:$0xf]  ;;  %s235_s30 = scalar_lea.vmem %s2458_s5, %s1801_s27 }
  0x1b   : > { %313 = vst.msk [vmem:[#allocation2 + $0x31] sm:$0xff] %vm282_vm1, %v276_v36  ;;  %v1207_v56 = vld [vmem:[%s2456_s3 + $0x18] sm:$0xf] }
  0x1c   : > { %317 = vst.msk [vmem:[#allocation2 + $0x71] sm:$0xff] %vm282_vm1, %v280_v37  ;;  %318 = vst.msk [vmem:[#allocation2 + $0x81] sm:$0xff] %vm282_vm1, %v281_v38 }
  0x1e   : > { %v1206_v6 = vld [vmem:[#allocation2 + $0x90] sm:$0xff] }
  0x1f   : > { %v2227_v39 = vld [vmem:[#allocation2 + $0x41] sm:$0xff]  ;;  %v1504_v8 = vld [vmem:[#allocation2 + $0x92] sm:$0xff] }
  0x20   : > { %v329_v40 = vld [vmem:[#allocation2 + $0x11] sm:$0xff]  ;;  %1978 = vmatprep.mubr.msk.f32.mxu1 %vm282_vm1, %v2227_v39  ;;  %v2280_v58 = vld [vmem:[#allocation2 + $0x42] sm:$0xff] }
  0x21   : > { %v2229_v41 = vld [vmem:[#allocation2 + $0x51] sm:$0xff]  ;;  %1973 = vmatmul.mubr.msk.f32.vlgmr.msra.gmra.mxu0 %vm282_vm1, %v329_v40  ;;  %v2234_v42 = vld [vmem:[#allocation2 + $0x21] sm:$0xff] }
  0x22   : > { %v2236_v43 = vld [vmem:[#allocation2 + $0x61] sm:$0xff]  ;;  %1979 = vmatmul.mubr.msk.f32.vlgmr.msra.gmra.mxu1 %vm282_vm1, %v2229_v41  ;;  %1999 = vmatpush3.msk.msra.mxu0 %vm361_vm0, %v610_v3  ;;  %v2244_v45 = vld [vmem:[#allocation2 + $0x31] sm:$0xff] }
  0x23   : > { %1985 = vmatpush3.msk.msra.mxu1 %vm361_vm0, %v2192_v2  ;;  %1975 = vmatprep.mubr.msk.f32.mxu0 %vm282_vm1, %v2234_v42  ;;  %v2253_v47 = vld [vmem:[#allocation2 + $0x71] sm:$0xff]  ;;  %v321_v52 = vld [vmem:[#allocation2 + $0x20] sm:$0xff]  ;;  %v1356_v2 = vld [vmem:[%s2456_s3 + $0x1c] sm:$0xf] }
  0x24   : > { %1981 = vmatprep.mubr.msk.f32.mxu1 %vm282_vm1, %v2236_v43  ;;  %2012 = vmatprep.subr.msk.mxu1 %vm361_vm0, %v759_v44  ;;  %v603_v50 = vld [vmem:[#allocation2 + $0x12] sm:$0xff]  ;;  %v2266_v53 = vld [vmem:[#allocation2 + $0x22] sm:$0xff] }
  0x25   : > { %1976 = vmatmul.mubr.msk.f32.gmra.mxu0 %vm282_vm1, %v2244_v45  ;;  %2026 = vmatprep.subr.msk.mxu0 %vm361_vm0, %v908_v46  ;;  %v320_v51 = vld [vmem:[#allocation2 + $0x10] sm:$0xff]  ;;  %v323_v59 = vld [vmem:[#allocation2 + $0x40] sm:$0xff] }
  0x26   : > { %1982 = vmatmul.mubr.msk.f32.gmra.mxu1 %vm282_vm1, %v2253_v47  ;;  %2000 = vmatprep.mubr.msk.f32.mxu0 %vm282_vm1, %v602_v48  ;;  %v2273_v55 = vld [vmem:[#allocation2 + $0x32] sm:$0xff]  ;;  %v608_v62 = vld [vmem:[#allocation2 + $0x62] sm:$0xff] }
  0x27   : > { %1986 = vmatprep.mubr.msk.f32.mxu1 %vm282_vm1, %v319_v49  ;;  %v322_v57 = vld [vmem:[#allocation2 + $0x30] sm:$0xff]  ;;  %v325_v63 = vld [vmem:[#allocation2 + $0x60] sm:$0xff] }
  0x28   : > { %v2291_v60 = vld [vmem:[#allocation2 + $0x52] sm:$0xff]  ;;  %v1505_v3 = vld [vmem:[%s2456_s3 + $0x20] sm:$0xf] }
  0x29   : > { %2001 = vmatmul.mubr.msk.f32.vlgmr.msra.gmra.mxu0 %vm282_vm1, %v603_v50  ;;  %v324_v61 = vld [vmem:[#allocation2 + $0x50] sm:$0xff]  ;;  %v907_v4 = vld [vmem:[#allocation2 + $0x81] sm:$0xff] }
  0x2a   : > { %1987 = vmatmul.mubr.msk.f32.vlgmr.msra.gmra.mxu1 %vm282_vm1, %v320_v51  ;;  %2027 = vmatpush3.msk.msra.mxu0 %vm361_vm0, %v908_v46  ;;  %v609_v0 = vld [vmem:[#allocation2 + $0x72] sm:$0xff]  ;;  %v758_v5 = vld [vmem:[#allocation2 + $0x80] sm:$0xff] }
  0x2b   : > { %2013 = vmatpush3.msk.msra.mxu1 %vm361_vm0, %v759_v44  ;;  %1989 = vmatprep.mubr.msk.f32.mxu1 %vm282_vm1, %v321_v52  ;;  %v326_v1 = vld [vmem:[#allocation2 + $0x70] sm:$0xff]  ;;  %v1056_v7 = vld [vmem:[#allocation2 + $0x82] sm:$0xff] }
  0x2c   : > { %2003 = vmatprep.mubr.msk.f32.mxu0 %vm282_vm1, %v2266_v53  ;;  %2040 = vmatprep.subr.msk.mxu1 %vm361_vm0, %v1057_v54 }
  0x2d   : > { %2004 = vmatmul.mubr.msk.f32.gmra.mxu0 %vm282_vm1, %v2273_v55  ;;  %2054 = vmatprep.subr.msk.mxu0 %vm361_vm0, %v1207_v56 }
  0x2e   : > { %1990 = vmatmul.mubr.msk.f32.gmra.mxu1 %vm282_vm1, %v322_v57  ;;  %2006 = vmatprep.mubr.msk.f32.mxu0 %vm282_vm1, %v2280_v58 }
  0x2f   : > { %1992 = vmatprep.mubr.msk.f32.mxu1 %vm282_vm1, %v323_v59 }
  0x31   : > { %2007 = vmatmul.mubr.msk.f32.gmra.mxu0 %vm282_vm1, %v2291_v60 }
  0x32   : > { %1993 = vmatmul.mubr.msk.f32.gmra.mxu1 %vm282_vm1, %v324_v61  ;;  %2009 = vmatprep.mubr.msk.f32.mxu0 %vm282_vm1, %v608_v62 }
  0x33   : > { %1995 = vmatprep.mubr.msk.f32.mxu1 %vm282_vm1, %v325_v63 }
  0x35   : > { %2010 = vmatmul.mubr.msk.f32.gmra.mxu0 %vm282_vm1, %v609_v0 }
  0x36   : > { %1996 = vmatmul.mubr.msk.f32.gmra.mxu1 %vm282_vm1, %v326_v1  ;;  %2028 = vmatprep.mubr.msk.f32.mxu0 %vm282_vm1, %v329_v40 }
  0x37   : > { %2014 = vmatprep.mubr.msk.f32.mxu1 %vm282_vm1, %v320_v51 }
  0x39   : > { %2029 = vmatmul.mubr.msk.f32.vlgmr.msra.gmra.mxu0 %vm282_vm1, %v2234_v42 }
  0x3a   : > { %2015 = vmatmul.mubr.msk.f32.vlgmr.msra.gmra.mxu1 %vm282_vm1, %v321_v52  ;;  %2055 = vmatpush3.msk.msra.mxu0 %vm361_vm0, %v1207_v56 }
  0x3b   : > { %2041 = vmatpush3.msk.msra.mxu1 %vm361_vm0, %v1057_v54  ;;  %2017 = vmatprep.mubr.msk.f32.mxu1 %vm282_vm1, %v322_v57 }
  0x3c   : > { %2031 = vmatprep.mubr.msk.f32.mxu0 %vm282_vm1, %v2244_v45  ;;  %2068 = vmatprep.subr.msk.mxu1 %vm361_vm0, %v1356_v2 }
  0x3d   : > { %2032 = vmatmul.mubr.msk.f32.gmra.mxu0 %vm282_vm1, %v2227_v39  ;;  %2082 = vmatprep.subr.msk.mxu0 %vm361_vm0, %v1505_v3 }
  0x3e   : > { %2018 = vmatmul.mubr.msk.f32.gmra.mxu1 %vm282_vm1, %v323_v59  ;;  %2034 = vmatprep.mubr.msk.f32.mxu0 %vm282_vm1, %v2229_v41 }
  0x3f   : > { %2020 = vmatprep.mubr.msk.f32.mxu1 %vm282_vm1, %v324_v61 }
  0x41   : > { %2035 = vmatmul.mubr.msk.f32.gmra.mxu0 %vm282_vm1, %v2236_v43 }
  0x42   : > { %2021 = vmatmul.mubr.msk.f32.gmra.mxu1 %vm282_vm1, %v325_v63  ;;  %2037 = vmatprep.mubr.msk.f32.mxu0 %vm282_vm1, %v2253_v47 }
  0x43   : > { %2023 = vmatprep.mubr.msk.f32.mxu1 %vm282_vm1, %v326_v1 }
  0x45   : > { %2038 = vmatmul.mubr.msk.f32.gmra.mxu0 %vm282_vm1, %v907_v4 }
  0x46   : > { %2024 = vmatmul.mubr.msk.f32.gmra.mxu1 %vm282_vm1, %v758_v5  ;;  %2056 = vmatprep.mubr.msk.f32.mxu0 %vm282_vm1, %v321_v52 }
  0x47   : > { %2042 = vmatprep.mubr.msk.f32.mxu1 %vm282_vm1, %v603_v50 }
  0x49   : > { %2057 = vmatmul.mubr.msk.f32.vlgmr.msra.gmra.mxu0 %vm282_vm1, %v322_v57 }
  0x4a   : > { %2043 = vmatmul.mubr.msk.f32.vlgmr.msra.gmra.mxu1 %vm282_vm1, %v2266_v53  ;;  %2083 = vmatpush3.msk.msra.mxu0 %vm361_vm0, %v1505_v3 }
  0x4b   : > { %2069 = vmatpush3.msk.msra.mxu1 %vm361_vm0, %v1356_v2  ;;  %2045 = vmatprep.mubr.msk.f32.mxu1 %vm282_vm1, %v2273_v55 }
  0x4c   : > { %2059 = vmatprep.mubr.msk.f32.mxu0 %vm282_vm1, %v323_v59 }
  0x4d   : > { %2060 = vmatmul.mubr.msk.f32.gmra.mxu0 %vm282_vm1, %v324_v61 }
  0x4e   : > { %2046 = vmatmul.mubr.msk.f32.gmra.mxu1 %vm282_vm1, %v2280_v58  ;;  %2062 = vmatprep.mubr.msk.f32.mxu0 %vm282_vm1, %v325_v63 }
  0x4f   : > { %2048 = vmatprep.mubr.msk.f32.mxu1 %vm282_vm1, %v2291_v60 }
  0x51   : > { %2063 = vmatmul.mubr.msk.f32.gmra.mxu0 %vm282_vm1, %v326_v1 }
  0x52   : > { %2049 = vmatmul.mubr.msk.f32.gmra.mxu1 %vm282_vm1, %v608_v62  ;;  %2065 = vmatprep.mubr.msk.f32.mxu0 %vm282_vm1, %v758_v5 }
  0x53   : > { %2051 = vmatprep.mubr.msk.f32.mxu1 %vm282_vm1, %v609_v0 }
  0x55   : > { %2066 = vmatmul.mubr.msk.f32.gmra.mxu0 %vm282_vm1, %v1206_v6 }
  0x56   : > { %2052 = vmatmul.mubr.msk.f32.gmra.mxu1 %vm282_vm1, %v1056_v7  ;;  %2084 = vmatprep.mubr.msk.f32.mxu0 %vm282_vm1, %v2266_v53 }
  0x57   : > { %2070 = vmatprep.mubr.msk.f32.mxu1 %vm282_vm1, %v2234_v42 }
  0x59   : > { %2085 = vmatmul.mubr.msk.f32.vlgmr.msra.gmra.mxu0 %vm282_vm1, %v2273_v55 }
  0x5a   : > { %2071 = vmatmul.mubr.msk.f32.vlgmr.msra.gmra.mxu1 %vm282_vm1, %v2244_v45  ;;  %2087 = vmatprep.mubr.msk.f32.mxu0 %vm282_vm1, %v2280_v58 }
  0x5b   : > { %2073 = vmatprep.mubr.msk.f32.mxu1 %vm282_vm1, %v2227_v39 }
  0x5d   : > { %2088 = vmatmul.mubr.msk.f32.gmra.mxu0 %vm282_vm1, %v2291_v60 }
  0x5e   : > { %2074 = vmatmul.mubr.msk.f32.gmra.mxu1 %vm282_vm1, %v2229_v41  ;;  %2090 = vmatprep.mubr.msk.f32.mxu0 %vm282_vm1, %v608_v62 }
  0x5f   : > { %2076 = vmatprep.mubr.msk.f32.mxu1 %vm282_vm1, %v2236_v43 }
  0x61   : > { %2091 = vmatmul.mubr.msk.f32.gmra.mxu0 %vm282_vm1, %v609_v0 }
  0x62   : > { %2077 = vmatmul.mubr.msk.f32.gmra.mxu1 %vm282_vm1, %v2253_v47  ;;  %2093 = vmatprep.mubr.msk.f32.mxu0 %vm282_vm1, %v1056_v7 }
  0x63   : > { %2079 = vmatprep.mubr.msk.f32.mxu1 %vm282_vm1, %v907_v4 }
  0x65   : > { %2094 = vmatmul.mubr.msk.f32.gmra.mxu0 %vm282_vm1, %v1504_v8 }
  0x66   : > { %2080 = vmatmul.mubr.msk.f32.gmra.mxu1 %vm282_vm1, %v1355_v9 }
  0xe1   : > { %v1974_v10 = vpop.f32.mrf.mxu0 }
  0xe2   : > { %v1980_v11 = vpop.f32.mrf.mxu1 }
  0xe3   : > { %v431_v12 = vpop.f32.mrf.mxu0 }
  0xe4   : > { %v451_v13 = vpop.f32.mrf.mxu1 }
  0xe5   : > { %v1977_v14 = vpop.f32.mrf.mxu0 }
  0xe6   : > { %v2381_v15 = vpop.f32.mrf.mxu1 }
  0xe7   : > { %v441_v16 = vpop.f32.mrf.mxu0 }
  0xe8   : > { %v2383_v17 = vpop.f32.mrf.mxu1 }
  0xe9   : > { %v2002_v18 = vpop.f32.mrf.mxu0 }
  0xea   : > { %v1988_v19 = vpop.f32.mrf.mxu1 }
  0xeb   : > { %v704_v20 = vpop.f32.mrf.mxu0  ;;  %v569_v50 = vadd.f32 %v1988_v19, %v1974_v10 }
  0xec   : > { %v563_v21 = vpop.f32.mrf.mxu1 }
  0xed   : > { %v2005_v22 = vpop.f32.mrf.mxu0  ;;  %v564_v53 = vadd.f32 %v563_v21, %v431_v12  ;;  %v744_v56 = vadd.f32 %v2002_v18, %v569_v50 }
  0xee   : > { %v1991_v23 = vpop.f32.mrf.mxu1 }
  0xef   : > { %v714_v24 = vpop.f32.mrf.mxu0  ;;  %v579_v57 = vadd.f32 %v1991_v23, %v1977_v14  ;;  %v743_v60 = vadd.f32 %v704_v20, %v564_v53 }
  0xf0   : > { %v573_v25 = vpop.f32.mrf.mxu1 }
  0xf1   : > { %v2008_v26 = vpop.f32.mrf.mxu0  ;;  %v574_v63 = vadd.f32 %v573_v25, %v441_v16  ;;  %v746_v1 = vadd.f32 %v2005_v22, %v579_v57 }
  0xf2   : > { %v1994_v27 = vpop.f32.mrf.mxu1 }
  0xf3   : > { %v724_v28 = vpop.f32.mrf.mxu0  ;;  %v589_v2 = vadd.f32 %v1994_v27, %v1980_v11  ;;  %v745_v10 = vadd.f32 %v714_v24, %v574_v63 }
  0xf4   : > { %v583_v29 = vpop.f32.mrf.mxu1 }
  0xf5   : > { %v2385_v30 = vpop.f32.mrf.mxu0  ;;  %v584_v5 = vadd.f32 %v583_v29, %v451_v13  ;;  %v748_v18 = vadd.f32 %v2008_v26, %v589_v2 }
  0xf6   : > { %v1997_v31 = vpop.f32.mrf.mxu1 }
  0xf7   : > { %v2387_v32 = vpop.f32.mrf.mxu0  ;;  %v747_v20 = vadd.f32 %v724_v28, %v584_v5  ;;  %v599_v16 = vadd.f32 %v1997_v31, %v2381_v15 }
  0xf8   : > { %v593_v33 = vpop.f32.mrf.mxu1 }
  0xf9   : > { %v2030_v34 = vpop.f32.mrf.mxu0  ;;  %v594_v22 = vadd.f32 %v593_v33, %v2383_v17 }
  0xfa   : > { %v2016_v35 = vpop.f32.mrf.mxu1 }
  0xfb   : > { %v1002_v36 = vpop.f32.mrf.mxu0  ;;  %v893_v61 = vadd.f32 %v2016_v35, %v744_v56  ;;  %v749_v28 = vadd.f32 %v2387_v32, %v594_v22 }
  0xfc   : > { %v853_v37 = vpop.f32.mrf.mxu1 }
  0xfd   : > { %v2033_v38 = vpop.f32.mrf.mxu0  ;;  %v892_v3 = vadd.f32 %v853_v37, %v743_v60  ;;  %v1042_v7 = vadd.f32 %v2030_v34, %v893_v61  ;;  %v750_v37 = vadd.f32 %v2385_v30, %v599_v16 }
  0xfe   : > { %v2019_v39 = vpop.f32.mrf.mxu1 }
  0xff   : > { %v1012_v40 = vpop.f32.mrf.mxu0  ;;  %v895_v8 = vadd.f32 %v2019_v39, %v746_v1  ;;  %v1041_v14 = vadd.f32 %v1002_v36, %v892_v3 }
 0x100   : > { %v863_v41 = vpop.f32.mrf.mxu1 }
 0x101   : > { %v2036_v42 = vpop.f32.mrf.mxu0  ;;  %v894_v11 = vadd.f32 %v863_v41, %v745_v10  ;;  %v1044_v25 = vadd.f32 %v2033_v38, %v895_v8 }
 0x102   : > { %v2022_v43 = vpop.f32.mrf.mxu1 }
 0x103   : > { %v1022_v44 = vpop.f32.mrf.mxu0  ;;  %v897_v13 = vadd.f32 %v2022_v43, %v748_v18  ;;  %v1043_v15 = vadd.f32 %v1012_v40, %v894_v11 }
 0x104   : > { %v873_v45 = vpop.f32.mrf.mxu1 }
 0x105   : > { %v2389_v46 = vpop.f32.mrf.mxu0  ;;  %v896_v34 = vadd.f32 %v873_v45, %v747_v20  ;;  %v1046_v17 = vadd.f32 %v2036_v42, %v897_v13 }
 0x106   : > { %v2025_v47 = vpop.f32.mrf.mxu1 }
 0x107   : > { %v2391_v48 = vpop.f32.mrf.mxu0  ;;  %v1045_v41 = vadd.f32 %v1022_v44, %v896_v34  ;;  %v899_v43 = vadd.f32 %v2025_v47, %v750_v37 }
 0x108   : > { %v883_v49 = vpop.f32.mrf.mxu1 }
 0x109   : > { %v2058_v51 = vpop.f32.mrf.mxu0  ;;  %v898_v50 = vadd.f32 %v883_v49, %v749_v28 }
 0x10a   : > { %v2044_v52 = vpop.f32.mrf.mxu1 }
 0x10b   : > { %v1301_v54 = vpop.f32.mrf.mxu0  ;;  %v1191_v19 = vadd.f32 %v2044_v52, %v1042_v7 }
 0x10c   : > { %v1151_v55 = vpop.f32.mrf.mxu1 }
 0x10d   : > { %v2061_v58 = vpop.f32.mrf.mxu0  ;;  %v1190_v27 = vadd.f32 %v1151_v55, %v1041_v14  ;;  %v1341_v26 = vadd.f32 %v2058_v51, %v1191_v19  ;;  %v1048_v55 = vadd.f32 %v2389_v46, %v899_v43 }
 0x10e   : > { %v2047_v59 = vpop.f32.mrf.mxu1 }
 0x10f   : > { %v1311_v62 = vpop.f32.mrf.mxu0  ;;  %v1193_v35 = vadd.f32 %v2047_v59, %v1044_v25  ;;  %v1340_v33 = vadd.f32 %v1301_v54, %v1190_v27  ;;  %v1047_v59 = vadd.f32 %v2391_v48, %v898_v50 }
 0x110   : > { %v1161_v0 = vpop.f32.mrf.mxu1 }
 0x111   : > { %v2064_v4 = vpop.f32.mrf.mxu0  ;;  %v1192_v52 = vadd.f32 %v1161_v0, %v1043_v15  ;;  %v1343_v45 = vadd.f32 %v2061_v58, %v1193_v35 }
 0x112   : > { %v2050_v6 = vpop.f32.mrf.mxu1 }
 0x113   : > { %v1321_v9 = vpop.f32.mrf.mxu0  ;;  %v1195_v32 = vadd.f32 %v2050_v6, %v1046_v17  ;;  %v1342_v56 = vadd.f32 %v1311_v62, %v1192_v52 }
 0x114   : > { %v1171_v12 = vpop.f32.mrf.mxu1 }
 0x115   : > { %v2393_v21 = vpop.f32.mrf.mxu0  ;;  %v1194_v54 = vadd.f32 %v1171_v12, %v1045_v41  ;;  %v1345_v58 = vadd.f32 %v2064_v4, %v1195_v32 }
 0x116   : > { %v2053_v23 = vpop.f32.mrf.mxu1 }
 0x117   : > { %v2397_v29 = vpop.f32.mrf.mxu0  ;;  %v1197_v0 = vadd.f32 %v2053_v23, %v1048_v55  ;;  %v1344_v6 = vadd.f32 %v1321_v9, %v1194_v54 }
 0x118   : > { %v1181_v24 = vpop.f32.mrf.mxu1 }
 0x119   : > { %v2086_v36 = vpop.f32.mrf.mxu0  ;;  %v1196_v7 = vadd.f32 %v1181_v24, %v1047_v59  ;;  %v1347_v20 = vadd.f32 %v2393_v21, %v1197_v0 }
 0x11a   : > { %v2072_v31 = vpop.f32.mrf.mxu1 }
 0x11b   : > { %v1490_v39 = vadd.f32 %v2072_v31, %v1341_v26  ;;  %v1599_v38 = vpop.f32.mrf.mxu0  ;;  %v1346_v34 = vadd.f32 %v2397_v29, %v1196_v7 }
 0x11c   : > { %v1450_v30 = vpop.f32.mrf.mxu1 }
 0x11d   : > { %v1639_v40 = vadd.f32 %v2086_v36, %v1490_v39  ;;  %v1489_v42 = vadd.f32 %v1450_v30, %v1340_v33  ;;  %v2089_v51 = vpop.f32.mrf.mxu0 }
 0x11e   : > { %v2075_v53 = vpop.f32.mrf.mxu1 }
 0x11f   : > { %1699 = vst.msk [vmem:[%s2406_s26 + $0x8] sm:$0xff] %vm282_vm1, %v1639_v40  ;;  %v1638_v44 = vadd.f32 %v1599_v38, %v1489_v42  ;;  %v1492_v47 = vadd.f32 %v2075_v53, %v1343_v45  ;;  %v1609_v49 = vpop.f32.mrf.mxu0  ;;  %v1669_v1 = vmul.f32 %v1639_v40, %v1639_v40  ;;  %v1647_v48 = vsel %vm282_vm1, %v1639_v40, 0.0 }
 0x120   : > { %v1460_v57 = vpop.f32.mrf.mxu1 }
 0x121   : > { %v1668_v60 = vmul.f32 %v1638_v44, %v1638_v44  ;;  %1698 = vst.msk [vmem:[%s2406_s26] sm:$0xff] %vm282_vm1, %v1638_v44  ;;  %v1641_v61 = vadd.f32 %v2089_v51, %v1492_v47  ;;  %v2092_v63 = vpop.f32.mrf.mxu0  ;;  %v1646_v2 = vsel %vm282_vm1, %v1638_v44, 0.0  ;;  %v1491_v3 = vadd.f32 %v1460_v57, %v1342_v56 }
 0x122   : > { %v2078_v5 = vpop.f32.mrf.mxu1  ;;  %v1648_v12 = vadd.f32 %v1647_v48, %v1646_v2  ;;  %v1677_v9 = vsel %vm282_vm1, %v1669_v1, 0.0 }
 0x123   : > { %1701 = vst.msk [vmem:[%s2406_s26 + $0x18] sm:$0xff] %vm282_vm1, %v1641_v61  ;;  %v1494_v46 = vadd.f32 %v2078_v5, %v1345_v58  ;;  %v1619_v62 = vpop.f32.mrf.mxu0  ;;  %v1676_v4 = vsel %vm282_vm1, %v1668_v60, 0.0  ;;  %v1640_v8 = vadd.f32 %v1609_v49, %v1491_v3  ;;  %v1671_v18 = vmul.f32 %v1641_v61, %v1641_v61 }
 0x124   : > { %v1470_v10 = vpop.f32.mrf.mxu1  ;;  %v1678_v23 = vadd.f32 %v1677_v9, %v1676_v4  ;;  %v1651_v24 = vsel %vm282_vm1, %v1641_v61, 0.0 }
 0x125   : > { %v1643_v14 = vadd.f32 %v2092_v63, %v1494_v46  ;;  %v1493_v19 = vadd.f32 %v1470_v10, %v1344_v6  ;;  %v1649_v16 = vsel %vm282_vm1, %v1640_v8, 0.0  ;;  %v1670_v22 = vmul.f32 %v1640_v8, %v1640_v8  ;;  %1700 = vst.msk [vmem:[%s2406_s26 + $0x10] sm:$0xff] %vm282_vm1, %v1640_v8  ;;  %v2095_v27 = vpop.f32.mrf.mxu0 }
 0x126   : > { %v2081_v11 = vpop.f32.mrf.mxu1  ;;  %v1650_v25 = vadd.f32 %v1649_v16, %v1648_v12  ;;  %v1681_v36 = vsel %vm282_vm1, %v1671_v18, 0.0 }
 0x127   : > { %1703 = vst.msk [vmem:[%s2406_s26 + $0x28] sm:$0xff] %vm282_vm1, %v1643_v14  ;;  %v1642_v13 = vadd.f32 %v1619_v62, %v1493_v19  ;;  %v1679_v21 = vsel %vm282_vm1, %v1670_v22, 0.0  ;;  %v1496_v26 = vadd.f32 %v2081_v11, %v1347_v20  ;;  %v1673_v31 = vmul.f32 %v1643_v14, %v1643_v14  ;;  %v1629_v41 = vpop.f32.mrf.mxu0 }
 0x128   : > { %v1480_v35 = vpop.f32.mrf.mxu1  ;;  %v1680_v37 = vadd.f32 %v1679_v21, %v1678_v23  ;;  %v1652_v28 = vadd.f32 %v1651_v24, %v1650_v25  ;;  %v1655_v43 = vsel %vm282_vm1, %v1643_v14, 0.0 }
 0x129   : > { %v1653_v15 = vsel %vm282_vm1, %v1642_v13, 0.0  ;;  %1702 = vst.msk [vmem:[%s2406_s26 + $0x20] sm:$0xff] %vm282_vm1, %v1642_v13  ;;  %v1672_v17 = vmul.f32 %v1642_v13, %v1642_v13  ;;  %v1645_v33 = vadd.f32 %v2095_v27, %v1496_v26  ;;  %v1495_v29 = vadd.f32 %v1480_v35, %v1346_v34 }
 0x12a   : > { %v1654_v39 = vadd.f32 %v1653_v15, %v1652_v28  ;;  %v1682_v38 = vadd.f32 %v1681_v36, %v1680_v37  ;;  %v1685_v32 = vsel %vm282_vm1, %v1673_v31, 0.0 }
 0x12b   : > { %v1683_v50 = vsel %vm282_vm1, %v1672_v17, 0.0  ;;  %1705 = vst.msk [vmem:[%s2406_s26 + $0x38] sm:$0xff] %vm282_vm1, %v1645_v33  ;;  %v1644_v52 = vadd.f32 %v1629_v41, %v1495_v29  ;;  %v1675_v40 = vmul.f32 %v1645_v33, %v1645_v33  ;;  %v1659_v44 = vsel %vm282_vm1, %v1645_v33, 0.0 }
 0x12c   : > { %v1684_v30 = vadd.f32 %v1683_v50, %v1682_v38  ;;  %v1656_v45 = vadd.f32 %v1655_v43, %v1654_v39 }
 0x12d   : > { %v1657_v42 = vsel %vm282_vm1, %v1644_v52, 0.0  ;;  %v1674_v51 = vmul.f32 %v1644_v52, %v1644_v52  ;;  %1704 = vst.msk [vmem:[%s2406_s26 + $0x30] sm:$0xff] %vm282_vm1, %v1644_v52  ;;  %v1689_v56 = vsel %vm282_vm1, %v1675_v40, 0.0 }
 0x12e   : > { %v1658_v53 = vadd.f32 %v1657_v42, %v1656_v45  ;;  %v1686_v54 = vadd.f32 %v1685_v32, %v1684_v30 }
 0x12f   : > { %v1687_v47 = vsel %vm282_vm1, %v1674_v51, 0.0 }
 0x130   : > { %v1660_v49 = vadd.f32 %v1659_v44, %v1658_v53  ;;  %v1688_v55 = vadd.f32 %v1687_v47, %v1686_v54 }
 0x132   : > { %v1661_v57 = vrot.slane %v1660_v49, 4  ;;  %v1690_v59 = vadd.f32 %v1689_v56, %v1688_v55 }
 0x134   : > { %v1662_v58 = vadd.f32 %v1661_v57, %v1660_v49  ;;  %v1691_v60 = vrot.slane %v1690_v59, 4 }
 0x136   : > { %v1663_v61 = vrot.slane %v1662_v58, 2  ;;  %v1692_v63 = vadd.f32 %v1691_v60, %v1690_v59 }
 0x138   : > { %v1664_v0 = vadd.f32 %v1663_v61, %v1662_v58  ;;  %v1693_v1 = vrot.slane %v1692_v63, 2 }
 0x13a   : > { %v1665_v2 = vrot.slane %v1664_v0, 1  ;;  %v1694_v3 = vadd.f32 %v1693_v1, %v1692_v63 }
 0x13c   : > { %v1666_v5 = vadd.f32 %v1665_v2, %v1664_v0  ;;  %v1695_v6 = vrot.slane %v1694_v3, 1 }
 0x13e   : > { %1667 = vst.msk [vmem:[%s235_s30] sm:$0x1] %vm289_vm3, %v1666_v5  ;;  %v1696_v46 = vadd.f32 %v1695_v6, %v1694_v3 }
 0x140   : > { %1697 = vst.msk [vmem:[%s235_s30 + $0x1] sm:$0x1] %vm289_vm3, %v1696_v46 }
 0x141 PF: > { %s16_s18 = sadd.s32 1, %s2113_s18  }
 0x142   : > { %p13_p4 = scmp.ge.s32.totalorder %s16_s18, 4  }
 0x144   :  { %15 = sbr.rel (!%p13_p4) target bundleno = 1 (0x1), region = 81 }

// kernel: bottleneck_forward.7
= control target key start
LH: loop header
LB: loop body
LE: loop exit
PB: predicated region body
PF: predicated region fallthrough
CT: control target
= control target key end

     0   :  { %vm155_vm0 = vcmask 1043456   ;;  %vm106_vm1 = vcmask 31744   ;;  %s783_s0 = inlined_call_operand.vmem [shape: f32[128,4], index: 0, kind: input, shape index: {}]   ;;  %s784_s1 = inlined_call_operand.vmem [shape: f32[128,16], index: 1, kind: input, shape index: {}]   ;;  %s785_s2 = inlined_call_operand.vmem [shape: f32[1,4], index: 2, kind: input, shape index: {}]   ;;  %s786_s3 = inlined_call_operand.vmem [shape: f32[1,4], index: 3, kind: input, shape index: {}]   ;;  %s787_s4 = inlined_call_operand.vmem [shape: f32[4,16], index: 4, kind: input, shape index: {}]   ;;  %s788_s5 = inlined_call_operand.vmem [shape: f32[1,16], index: 5, kind: input, shape index: {}]   ;;  %s789_s6 = inlined_call_operand.vmem [shape: f32[1,16], index: 6, kind: input, shape index: {}]   ;;  %s790_s7 = inlined_call_operand.hbm [shape: f32[128,16], index: 7, kind: output, shape index: {}]  }
   0x1   :  { %v105_v0 = vld [vmem:[%s787_s4] sm:$0xf]  ;;  %v28_v6 = vld [vmem:[%s783_s0 + $0x8] sm:$0xff]  ;;  %v29_v10 = vld [vmem:[%s783_s0 + $0x10] sm:$0xff] }
   0x2   :  { %v27_v1 = vld [vmem:[%s783_s0] sm:$0xff]  ;;  %469 = vmatprep.subr.msk.mxu0 %vm155_vm0, %v105_v0  ;;  %495 = vmatprep.subr.msk.mxu1 %vm155_vm0, %v105_v0  ;;  %v36_v9 = vld [vmem:[%s783_s0 + $0x48] sm:$0xff]  ;;  %v37_v11 = vld [vmem:[%s783_s0 + $0x50] sm:$0xff] }
   0x3   :  { %v574_v2 = vld [vmem:[%s785_s2] ss:$0 sm:$0xff]  ;;  %470 = vmatpush3.msk.msra.mxu0 %vm155_vm0, %v105_v0  ;;  %496 = vmatpush3.msk.msra.mxu1 %vm155_vm0, %v105_v0  ;;  %v30_v16 = vld [vmem:[%s783_s0 + $0x18] sm:$0xff]  ;;  %v32_v28 = vld [vmem:[%s783_s0 + $0x28] sm:$0xff] }
   0x4   :  { %v50_v3 = vmul.f32 %v574_v2, %v27_v1  ;;  %v580_v4 = vld [vmem:[%s786_s3] ss:$0 sm:$0xff]  ;;  %v51_v8 = vmul.f32 %v574_v2, %v28_v6  ;;  %v59_v13 = vmul.f32 %v574_v2, %v36_v9  ;;  %v52_v14 = vmul.f32 %v574_v2, %v29_v10  ;;  %v38_v17 = vld [vmem:[%s783_s0 + $0x58] sm:$0xff]  ;;  %v40_v33 = vld [vmem:[%s783_s0 + $0x68] sm:$0xff] }
   0x5   :  { %v35_v5 = vld [vmem:[%s783_s0 + $0x40] sm:$0xff]  ;;  %v60_v15 = vmul.f32 %v574_v2, %v37_v11  ;;  %v53_v20 = vmul.f32 %v574_v2, %v30_v16  ;;  %v61_v21 = vmul.f32 %v574_v2, %v38_v17  ;;  %v33_v34 = vld [vmem:[%s783_s0 + $0x30] sm:$0xff] }
   0x6   :  { %v58_v7 = vmul.f32 %v574_v2, %v35_v5  ;;  %v73_v12 = vadd.f32 %v580_v4, %v50_v3  ;;  %v74_v19 = vadd.f32 %v580_v4, %v51_v8  ;;  %v31_v22 = vld [vmem:[%s783_s0 + $0x20] sm:$0xff]  ;;  %v82_v24 = vadd.f32 %v580_v4, %v59_v13 }
   0x7   :  { %v75_v25 = vadd.f32 %v580_v4, %v52_v14  ;;  %v83_v26 = vadd.f32 %v580_v4, %v60_v15  ;;  %v39_v27 = vld [vmem:[%s783_s0 + $0x60] sm:$0xff]  ;;  %v76_v31 = vadd.f32 %v580_v4, %v53_v20  ;;  %v84_v32 = vadd.f32 %v580_v4, %v61_v21 }
   0x8   :  { %v81_v18 = vadd.f32 %v580_v4, %v58_v7  ;;  %v89_v23 = vmax.f32 %v73_v12, 0.0  ;;  %v90_v30 = vmax.f32 %v74_v19, 0.0 }
   0xa   :  { %v97_v29 = vmax.f32 %v81_v18, 0.0 }
   0xb   :  { %12 = vsyncpa [#allocation3], 0  ;;  %471 = vmatprep.mubr.msk.f32.mxu0 %vm106_vm1, %v89_v23  ;;  %v98_v35 = vmax.f32 %v82_v24, 0.0  ;;  %v91_v36 = vmax.f32 %v75_v25, 0.0  ;;  %v99_v37 = vmax.f32 %v83_v26, 0.0  ;;  %v54_v38 = vmul.f32 %v574_v2, %v31_v22  ;;  %v41_v39 = vld [vmem:[%s783_s0 + $0x70] sm:$0xff] }
   0xc   :  { %v34_v40 = vld [vmem:[%s783_s0 + $0x38] sm:$0xff]  ;;  %483 = vmatprep.mubr.msk.f32.mxu1 %vm106_vm1, %v97_v29  ;;  %472 = vmatmul.mubr.msk.f32.vlgmr.msra.gmra.mxu0 %vm106_vm1, %v90_v30  ;;  %v92_v41 = vmax.f32 %v76_v31, 0.0  ;;  %v62_v42 = vmul.f32 %v574_v2, %v39_v27  ;;  %v55_v43 = vmul.f32 %v574_v2, %v32_v28  ;;  %v100_v45 = vmax.f32 %v84_v32, 0.0  ;;  %v677_v3 = vld [vmem:[%s788_s5] ss:$0 sm:$0xff]  ;;  %v351_v8 = vld [vmem:[%s784_s1 + $0x8] sm:$0xff] }
   0xd   :  { %v42_v44 = vld [vmem:[%s783_s0 + $0x78] sm:$0xff]  ;;  %484 = vmatmul.mubr.msk.f32.vlgmr.msra.gmra.mxu1 %vm106_vm1, %v98_v35  ;;  %474 = vmatprep.mubr.msk.f32.mxu0 %vm106_vm1, %v91_v36  ;;  %v77_v46 = vadd.f32 %v580_v4, %v54_v38  ;;  %v63_v47 = vmul.f32 %v574_v2, %v40_v33  ;;  %v56_v48 = vmul.f32 %v574_v2, %v33_v34  ;;  %v682_v5 = vld [vmem:[%s789_s6] ss:$0 sm:$0xff]  ;;  %v359_v12 = vld [vmem:[%s784_s1 + $0x48] sm:$0xff]  ;;  %vm398_vm2 = vcmask 130048   ;;  %s522_s15 = smov [#allocation2]  }
   0xe   :  { %486 = vmatprep.mubr.msk.f32.mxu1 %vm106_vm1, %v99_v37  ;;  %v85_v49 = vadd.f32 %v580_v4, %v62_v42  ;;  %v78_v50 = vadd.f32 %v580_v4, %v55_v43  ;;  %v64_v51 = vmul.f32 %v574_v2, %v41_v39  ;;  %v57_v52 = vmul.f32 %v574_v2, %v34_v40  ;;  %v350_v16 = vld [vmem:[%s784_s1] sm:$0xff]  ;;  %v353_v26 = vld [vmem:[%s784_s1 + $0x18] sm:$0xff]  ;;  %v352_v38 = vld [vmem:[%s784_s1 + $0x10] sm:$0xff]  ;;  %s420_s6 = sshll.u32 %s522_s15, 4  ;;  %s421_s6 = int_to_ptr.vmem [resolvable:$true] %s420_s6 }
   0xf   :  { %v93_v53 = vmax.f32 %v77_v46, 0.0  ;;  %v86_v54 = vadd.f32 %v580_v4, %v63_v47  ;;  %v79_v55 = vadd.f32 %v580_v4, %v56_v48  ;;  %v65_v56 = vmul.f32 %v574_v2, %v42_v44  ;;  %v358_v21 = vld [vmem:[%s784_s1 + $0x40] sm:$0xff]  ;;  %v361_v32 = vld [vmem:[%s784_s1 + $0x58] sm:$0xff]  ;;  %v360_v44 = vld [vmem:[%s784_s1 + $0x50] sm:$0xff]  ;;  %p505_p1 = scmp.lt.s32.totalorder %s421_s6, %s421_s6 }
  0x10   :  { %475 = vmatmul.mubr.msk.f32.gmra.mxu0 %vm106_vm1, %v92_v41  ;;  %v101_v57 = vmax.f32 %v85_v49, 0.0  ;;  %v94_v58 = vmax.f32 %v78_v50, 0.0  ;;  %v87_v59 = vadd.f32 %v580_v4, %v64_v51  ;;  %v80_v60 = vadd.f32 %v580_v4, %v57_v52  ;;  %v355_v50 = vld [vmem:[%s784_s1 + $0x28] sm:$0xff] }
  0x11   :  { %487 = vmatmul.mubr.msk.f32.gmra.mxu1 %vm106_vm1, %v100_v45  ;;  %477 = vmatprep.mubr.msk.f32.mxu0 %vm106_vm1, %v93_v53  ;;  %v102_v61 = vmax.f32 %v86_v54, 0.0  ;;  %v95_v62 = vmax.f32 %v79_v55, 0.0  ;;  %v88_v63 = vadd.f32 %v580_v4, %v65_v56  ;;  %v363_v56 = vld [vmem:[%s784_s1 + $0x68] sm:$0xff] }
  0x12   :  { %489 = vmatprep.mubr.msk.f32.mxu1 %vm106_vm1, %v101_v57  ;;  %v103_v0 = vmax.f32 %v87_v59, 0.0  ;;  %v96_v1 = vmax.f32 %v80_v60, 0.0 }
  0x13   :  { %v104_v2 = vmax.f32 %v88_v63, 0.0 }
  0x14   :  { %478 = vmatmul.mubr.msk.f32.gmra.mxu0 %vm106_vm1, %v94_v58 }
  0x15   :  { %490 = vmatmul.mubr.msk.f32.gmra.mxu1 %vm106_vm1, %v102_v61  ;;  %480 = vmatprep.mubr.msk.f32.mxu0 %vm106_vm1, %v95_v62  ;;  %v354_v62 = vld [vmem:[%s784_s1 + $0x20] sm:$0xff] }
  0x16   :  { %492 = vmatprep.mubr.msk.f32.mxu1 %vm106_vm1, %v103_v0 }
  0x18   :  { %481 = vmatmul.mubr.msk.f32.gmra.mxu0 %vm106_vm1, %v96_v1 }
  0x19   :  { %493 = vmatmul.mubr.msk.f32.gmra.mxu1 %vm106_vm1, %v104_v2 }
  0xcc   :  { %v473_v4 = vpop.f32.mrf.mxu0 }
  0xcd   :  { %v312_v6 = vmul.f32 %v473_v4, %v677_v3  ;;  %v485_v7 = vpop.f32.mrf.mxu1 }
  0xce   :  { %v320_v9 = vmul.f32 %v485_v7, %v677_v3  ;;  %v225_v10 = vpop.f32.mrf.mxu0 }
  0xcf   :  { %v335_v11 = vadd.f32 %v682_v5, %v312_v6  ;;  %v311_v13 = vmul.f32 %v677_v3, %v225_v10  ;;  %v265_v14 = vpop.f32.mrf.mxu1  ;;  %v362_v6 = vld [vmem:[%s784_s1 + $0x60] sm:$0xff] }
  0xd0   :  { %v343_v15 = vadd.f32 %v682_v5, %v320_v9  ;;  %v319_v17 = vmul.f32 %v677_v3, %v265_v14  ;;  %v476_v18 = vpop.f32.mrf.mxu0 }
  0xd1   :  { %v367_v19 = vadd.f32 %v351_v8, %v335_v11  ;;  %v334_v20 = vadd.f32 %v682_v5, %v311_v13  ;;  %v314_v22 = vmul.f32 %v476_v18, %v677_v3  ;;  %v488_v23 = vpop.f32.mrf.mxu1  ;;  %v365_v18 = vld [vmem:[%s784_s1 + $0x78] sm:$0xff] }
  0xd2   :  { %v375_v24 = vadd.f32 %v359_v12, %v343_v15  ;;  %v342_v25 = vadd.f32 %v682_v5, %v319_v17  ;;  %v322_v27 = vmul.f32 %v488_v23, %v677_v3  ;;  %v235_v28 = vpop.f32.mrf.mxu0  ;;  %v357_v12 = vld [vmem:[%s784_s1 + $0x38] sm:$0xff] }
  0xd3   :  { %v383_v29 = vmax.f32 %v367_v19, 0.0  ;;  %v366_v30 = vadd.f32 %v350_v16, %v334_v20  ;;  %v337_v31 = vadd.f32 %v682_v5, %v314_v22  ;;  %v313_v33 = vmul.f32 %v677_v3, %v235_v28  ;;  %v275_v34 = vpop.f32.mrf.mxu1 }
  0xd4   :  { %v391_v35 = vmax.f32 %v375_v24, 0.0  ;;  %v374_v36 = vadd.f32 %v358_v21, %v342_v25  ;;  %v345_v37 = vadd.f32 %v682_v5, %v322_v27  ;;  %v321_v39 = vmul.f32 %v677_v3, %v275_v34  ;;  %v479_v40 = vpop.f32.mrf.mxu0  ;;  %v356_v24 = vld [vmem:[%s784_s1 + $0x30] sm:$0xff] }
  0xd5   :  { %400 = vst.msk [vmem:[#allocation2 + $0x8] sm:$0xff] %vm398_vm2, %v383_v29  ;;  %v382_v41 = vmax.f32 %v366_v30, 0.0  ;;  %v369_v42 = vadd.f32 %v353_v26, %v337_v31  ;;  %v336_v43 = vadd.f32 %v682_v5, %v313_v33  ;;  %v316_v45 = vmul.f32 %v479_v40, %v677_v3  ;;  %v491_v46 = vpop.f32.mrf.mxu1  ;;  %v364_v29 = vld [vmem:[%s784_s1 + $0x70] sm:$0xff]  ;;  %s500_s1 = scalar_lea.vmem %s421_s6, 2048 }
  0xd6   :  { %408 = vst.msk [vmem:[#allocation2 + $0x48] sm:$0xff] %vm398_vm2, %v391_v35  ;;  %v390_v47 = vmax.f32 %v374_v36, 0.0  ;;  %v377_v48 = vadd.f32 %v361_v32, %v345_v37  ;;  %v344_v49 = vadd.f32 %v682_v5, %v321_v39  ;;  %v324_v51 = vmul.f32 %v491_v46, %v677_v3  ;;  %v245_v52 = vpop.f32.mrf.mxu0  ;;  %p501_p0 = scmp.ne.s32.totalorder %s421_s6, %s500_s1  ;;  %p506_p2 = scmp.lt.s32.totalorder %s500_s1, %s500_s1 }
  0xd7   :  { %399 = vst.msk [vmem:[#allocation2] sm:$0xff] %vm398_vm2, %v382_v41  ;;  %v385_v53 = vmax.f32 %v369_v42, 0.0  ;;  %v368_v54 = vadd.f32 %v352_v38, %v336_v43  ;;  %v339_v55 = vadd.f32 %v682_v5, %v316_v45  ;;  %v315_v57 = vmul.f32 %v677_v3, %v245_v52  ;;  %v285_v58 = vpop.f32.mrf.mxu1 }
  0xd8   :  { %407 = vst.msk [vmem:[#allocation2 + $0x40] sm:$0xff] %vm398_vm2, %v390_v47  ;;  %v393_v59 = vmax.f32 %v377_v48, 0.0  ;;  %v376_v60 = vadd.f32 %v360_v44, %v344_v49  ;;  %v347_v61 = vadd.f32 %v682_v5, %v324_v51  ;;  %v323_v63 = vmul.f32 %v677_v3, %v285_v58  ;;  %v482_v0 = vpop.f32.mrf.mxu0  ;;  %p507_p3 = por %p506_p2, %p505_p1 }
  0xd9   :  { %402 = vst.msk [vmem:[#allocation2 + $0x18] sm:$0xff] %vm398_vm2, %v385_v53  ;;  %v384_v1 = vmax.f32 %v368_v54, 0.0  ;;  %v371_v2 = vadd.f32 %v355_v50, %v339_v55  ;;  %v338_v4 = vadd.f32 %v682_v5, %v315_v57  ;;  %v318_v7 = vmul.f32 %v482_v0, %v677_v3  ;;  %v494_v8 = vpop.f32.mrf.mxu1 }
  0xda   :  { %410 = vst.msk [vmem:[#allocation2 + $0x58] sm:$0xff] %vm398_vm2, %v393_v59  ;;  %v392_v9 = vmax.f32 %v376_v60, 0.0  ;;  %v379_v10 = vadd.f32 %v363_v56, %v347_v61  ;;  %v346_v11 = vadd.f32 %v682_v5, %v323_v63  ;;  %v326_v13 = vmul.f32 %v494_v8, %v677_v3  ;;  %v255_v14 = vpop.f32.mrf.mxu0  ;;  %p508_p4 = pnand %p507_p3, %p501_p0 }
  0xdb   :  { %401 = vst.msk [vmem:[#allocation2 + $0x10] sm:$0xff] %vm398_vm2, %v384_v1  ;;  %v387_v15 = vmax.f32 %v371_v2, 0.0  ;;  %v370_v16 = vadd.f32 %v354_v62, %v338_v4  ;;  %v341_v17 = vadd.f32 %v682_v5, %v318_v7  ;;  %v317_v19 = vmul.f32 %v677_v3, %v255_v14  ;;  %v295_v20 = vpop.f32.mrf.mxu1 }
  0xdc   :  { %409 = vst.msk [vmem:[#allocation2 + $0x50] sm:$0xff] %vm398_vm2, %v392_v9  ;;  %v395_v21 = vmax.f32 %v379_v10, 0.0  ;;  %v378_v22 = vadd.f32 %v362_v6, %v346_v11  ;;  %v349_v23 = vadd.f32 %v682_v5, %v326_v13  ;;  %v325_v25 = vmul.f32 %v677_v3, %v295_v20 }
  0xdd   :  { %404 = vst.msk [vmem:[#allocation2 + $0x28] sm:$0xff] %vm398_vm2, %v387_v15  ;;  %v386_v26 = vmax.f32 %v370_v16, 0.0  ;;  %v373_v27 = vadd.f32 %v357_v12, %v341_v17  ;;  %v340_v28 = vadd.f32 %v682_v5, %v317_v19 }
  0xde   :  { %412 = vst.msk [vmem:[#allocation2 + $0x68] sm:$0xff] %vm398_vm2, %v395_v21  ;;  %v394_v30 = vmax.f32 %v378_v22, 0.0  ;;  %v381_v31 = vadd.f32 %v365_v18, %v349_v23  ;;  %v348_v32 = vadd.f32 %v682_v5, %v325_v25 }
  0xdf   :  { %403 = vst.msk [vmem:[#allocation2 + $0x20] sm:$0xff] %vm398_vm2, %v386_v26  ;;  %v389_v3 = vmax.f32 %v373_v27, 0.0  ;;  %v372_v33 = vadd.f32 %v356_v24, %v340_v28 }
  0xe0   :  { %411 = vst.msk [vmem:[#allocation2 + $0x60] sm:$0xff] %vm398_vm2, %v394_v30  ;;  %v397_v34 = vmax.f32 %v381_v31, 0.0  ;;  %v380_v35 = vadd.f32 %v364_v29, %v348_v32 }
  0xe1   :  { %406 = vst.msk [vmem:[#allocation2 + $0x38] sm:$0xff] %vm398_vm2, %v389_v3  ;;  %v388_v36 = vmax.f32 %v372_v33, 0.0 }
  0xe2   :  { %414 = vst.msk [vmem:[#allocation2 + $0x78] sm:$0xff] %vm398_vm2, %v397_v34  ;;  %v396_v37 = vmax.f32 %v380_v35, 0.0 }
  0xe3   :  { %405 = vst.msk [vmem:[#allocation2 + $0x30] sm:$0xff] %vm398_vm2, %v388_v36 }
  0xe4   :  { %413 = vst.msk [vmem:[#allocation2 + $0x70] sm:$0xff] %vm398_vm2, %v396_v37 }
  0xe5   :  { %511 = shalt.err (!%p508_p4)
}
  0xe6   :  { %s523_s16 = smov 128   ;;  %s524_s17 = smov 8  }
  0xe7   :  { %426 = dma.vmem_to_hbm [thread:$0]  %s421_s6, 2048, %s790_s7, [#allocation3], %s523_s16, %s523_s16, %s524_s17  }
  0xe8   :  { %520 = dma.done.wait [#allocation3], 2048  }
  0xe9   :  { %521 = vsyncadd [#allocation3], 4294965248 }
  0xea   :  { %430 = vsyncpa [#allocation3], 1 }

</bundles_post_ra>
